<compile_context>
chip_gen: v6e
topology: v6e:2x2x1
jax: 0.10.0
libtpu: 0.0.40
codegen_flags: <defaults>
</compile_context>

<pallas_src>
from functools import partial

import numpy as np
import jax
import jax.numpy as jnp
from jax.experimental import pallas as pl
from jax.experimental.pallas import tpu as pltpu

_BN_EPS = 1e-5
_LEAKY_SLOPE = 0.01
_POOL_T, _POOL_S, _POOL_F = 8, 2, 4


# ----------------------------------------------------------------------------
# The fused Pallas kernel (one batch-block per grid step, batch on lanes)
# ----------------------------------------------------------------------------
def _tsception_kernel(x_ref, w_ref, o_ref, *, layout, ks, dims, slope):
    num_T, C_e, BB, T = dims["num_T"], dims["C_e"], dims["BB"], dims["T"]
    num_S, hidden = dims["num_S"], dims["hidden"]
    R = num_T * C_e
    Wl = BB * T                              # lanes = (batch-in-block, time)
    k1, k2, k3 = ks

    def get(name):                           # static slice of the packed slab
        off, r, c = layout[name]
        return w_ref[off:off + r, 0:c]

    def leaky(v):
        return jnp.where(v > 0, v, slope * v)

    x = x_ref[...].astype(jnp.float32)                 # (C_e, Wl + k1)
    # replicate electrode rows across the num_T temporal filters (row = c*C_e+e)
    x_rep = jnp.concatenate([x] * num_T, axis=0)       # (R, Wl + k1)

    taps = get("taps")                                 # (R, k1+k2+k3+3)
    w1, b1 = taps[:, 0:k1], taps[:, k1:k1 + 1]
    w2, b2 = taps[:, k1 + 1:k1 + 1 + k2], taps[:, k1 + 1 + k2:k1 + 2 + k2]
    w3 = taps[:, k1 + k2 + 2:k1 + k2 + 2 + k3]
    b3 = taps[:, k1 + k2 + 2 + k3:k1 + k2 + 3 + k3]

    # ---- Tception: shift-and-accumulate, ONE set of shifted views shared by
    #      all three branches (invalid tail lanes are zeroed by the pool mat).
    sh0 = x_rep[:, 0:Wl]
    acc1 = w1[:, 0:1] * sh0
    acc2 = w2[:, 0:1] * sh0
    acc3 = w3[:, 0:1] * sh0
    for j in range(1, k1):
        sh = x_rep[:, j:j + Wl]
        acc1 = acc1 + w1[:, j:j + 1] * sh
        if j < k2:
            acc2 = acc2 + w2[:, j:j + 1] * sh
        if j < k3:
            acc3 = acc3 + w3[:, j:j + 1] * sh
    acc = jnp.concatenate(
        [leaky(acc1 + b1), leaky(acc2 + b2), leaky(acc3 + b3)], axis=1)

    # ---- AvgPool(1,8) + branch concat (+ batch blocking) as ONE matmul ------
    out_t = jnp.dot(acc, get("pcat"), preferred_element_type=jnp.float32)  # (R, BB*W_t)

    # ---- Sception1 + both strided Sception2 heads stacked; BN_t folded ------
    ws = get("ws")                                     # (3*num_S, R+1) [W | bias]
    s = jnp.dot(ws[:, 0:R], out_t, preferred_element_type=jnp.float32)
    s = leaky(s + ws[:, R:R + 1])
    s = jnp.dot(s, get("p2"), preferred_element_type=jnp.float32)          # (3*num_S, BB*W_s)

    # ---- fusion conv (3x1 over the stacked heads); BN_s folded --------------
    wf = get("wf")                                     # (num_S, 3*num_S+1)
    fz = jnp.dot(wf[:, 0:3 * num_S], s, preferred_element_type=jnp.float32)
    fz = leaky(fz + wf[:, 3 * num_S:3 * num_S + 1])    # (num_S, BB*W_s)

    # ---- AvgPool(1,4) + temporal mean fused; batch stays on lanes -----------
    feat = jnp.dot(fz, get("p4m"), preferred_element_type=jnp.float32)     # (num_S, BB)

    # ---- fc head (BN_fusion folded into fc1); Dropout == identity (eval) ----
    fc1 = get("fc1")                                   # (hidden, num_S+1)
    h = jnp.dot(fc1[:, 0:num_S], feat,
                preferred_element_type=jnp.float32) + fc1[:, num_S:num_S + 1]
    h = jnp.maximum(h, 0.0)
    fc2 = get("fc2")                                   # (nc, hidden+1)
    logits = jnp.dot(fc2[:, 0:hidden], h,
                     preferred_element_type=jnp.float32) + fc2[:, hidden:hidden + 1]

    o_ref[...] = logits.astype(o_ref.dtype)            # (num_classes, BB)


# ----------------------------------------------------------------------------
# Parameter preparation: BN folding + pooling matrices + ONE packed slab
# ----------------------------------------------------------------------------
def prepare_operands(params, cfg, BB):
    C_e, T = cfg["C_e"], cfg["T"]
    num_T, num_S = cfg["num_T"], cfg["num_S"]
    ks = [int(w * cfg["sampling_rate"]) for w in (0.5, 0.25, 0.125)]
    Ls = [T - k + 1 for k in ks]
    Wts = [(L - _POOL_T) // _POOL_T + 1 for L in Ls]
    W_t = sum(Wts)
    W_s = (W_t - _POOL_S) // _POOL_S + 1
    W_f = (W_s - _POOL_F) // _POOL_F + 1
    half = C_e // 2
    assert C_e == 2 * half and half >= 1, "input_size[1] must be even"
    assert W_f >= 1
    R = num_T * C_e
    nh = 3                                   # Sception1 + two Sception2 heads

    def g(name):
        return np.asarray(params[name], np.float32)

    def bn_fold(name):
        q = params[name]
        scale = np.asarray(q["gamma"], np.float32) / np.sqrt(
            np.asarray(q["var"], np.float32) + _BN_EPS)
        shift = np.asarray(q["beta"], np.float32) - np.asarray(q["mean"], np.float32) * scale
        return scale, shift

    c_of_r = np.arange(R) // C_e
    e_of_r = np.arange(R) % C_e

    # --- Tception taps + bias, expanded to (c, e) rows, branches side by side
    taps = np.zeros((R, sum(ks) + 3), np.float32)
    col = 0
    for i, k in enumerate(ks):
        w = g(f"t{i+1}_w").reshape(num_T, k)
        taps[:, col:col + k] = w[c_of_r]
        taps[:, col + k] = g(f"t{i+1}_b")[c_of_r]
        col += k + 1

    # --- AvgPool(1,8) + branch concat (+ batch-block on lanes) in one matrix
    pcat = np.zeros((nh * BB * T, BB * W_t), np.float32)
    off = 0
    for i, Wi in enumerate(Wts):
        for b in range(BB):
            for w in range(Wi):
                r0 = i * BB * T + b * T + w * _POOL_T
                pcat[r0:r0 + _POOL_T, b * W_t + off + w] = 1.0 / _POOL_T
        off += Wi

    # --- Sception1 + Sception2 (two strided heads) stacked; BN_t folded -----
    sc_t, sh_t = bn_fold("bn_t")
    ws1, bs1 = g("s1_w"), g("s1_b")          # (num_S, num_T, C_e, 1)
    ws2, bs2 = g("s2_w"), g("s2_b")          # (num_S, num_T, half, 1)
    ws = np.zeros((nh * num_S, R), np.float32)
    bs = np.zeros((nh * num_S,), np.float32)
    for s in range(num_S):
        for r in range(R):
            c, e = int(c_of_r[r]), int(e_of_r[r])
            ws[s, r] = ws1[s, c, e, 0]
            hh = e // half
            ws[(1 + hh) * num_S + s, r] = ws2[s, c, e - hh * half, 0]
        bs[s] = bs1[s]
        bs[num_S + s] = bs2[s]
        bs[2 * num_S + s] = bs2[s]
    bs = bs + ws @ sh_t[c_of_r]
    ws = ws * sc_t[c_of_r][None, :]
    ws_ext = np.concatenate([ws, bs[:, None]], axis=1)

    # --- AvgPool(1,2) over the concatenated time axis, per batch lane block -
    p2 = np.zeros((BB * W_t, BB * W_s), np.float32)
    for b in range(BB):
        for w in range(W_s):
            p2[b * W_t + _POOL_S * w: b * W_t + _POOL_S * (w + 1),
               b * W_s + w] = 1.0 / _POOL_S

    # --- fusion conv over the 3 stacked heads; BN_s folded -------------------
    sc_s, sh_s = bn_fold("bn_s")
    wf, bf = g("f_w"), g("f_b")              # (num_S, num_S, 3, 1)
    wf_flat = np.zeros((num_S, nh * num_S), np.float32)
    for hh in range(nh):
        wf_flat[:, hh * num_S:(hh + 1) * num_S] = wf[:, :, hh, 0]
    bf_fold = bf + wf_flat @ np.tile(sh_s, nh)
    wf_fold = wf_flat * np.tile(sc_s, nh)[None, :]
    wf_ext = np.concatenate([wf_fold, bf_fold[:, None]], axis=1)

    # --- AvgPool(1,4) + temporal mean fused, per batch lane block ------------
    p4m = np.zeros((BB * W_s, BB), np.float32)
    for b in range(BB):
        p4m[b * W_s: b * W_s + _POOL_F * W_f, b] = 1.0 / (_POOL_F * W_f)

    # --- fc head; BN_fusion folded into fc1 ----------------------------------
    sc_f, sh_f = bn_fold("bn_f")
    w1, b1 = g("fc1_w"), g("fc1_b")
    w2, b2 = g("fc2_w"), g("fc2_b")
    fc1_ext = np.concatenate([w1 * sc_f[None, :], (b1 + w1 @ sh_f)[:, None]], axis=1)
    fc2_ext = np.concatenate([w2, b2[:, None]], axis=1)

    # --- pack EVERYTHING into ONE slab (row-concat, 8-row-aligned offsets) ---
    mats = dict(taps=taps, pcat=pcat, ws=ws_ext, p2=p2, wf=wf_ext,
                p4m=p4m, fc1=fc1_ext, fc2=fc2_ext)
    width = max(m.shape[1] for m in mats.values())
    layout, row = {}, 0
    for name, m in mats.items():
        layout[name] = (row, int(m.shape[0]), int(m.shape[1]))
        row += ((m.shape[0] + 7) // 8) * 8
    slab = np.zeros((row, width), np.float32)
    for name, m in mats.items():
        o, r, c = layout[name]
        slab[o:o + r, :c] = m

    return jnp.asarray(slab), layout, ks


# ----------------------------------------------------------------------------
# Forward wrapper (single pallas_call, batch-blocked parallel grid)
# ----------------------------------------------------------------------------
def tsception_forward(x_nchw, params, cfg):
    B = int(x_nchw.shape[0])
    C_e, T = cfg["C_e"], cfg["T"]
    nc = cfg["num_classes"]

    # batch blocking: >=2 grid steps when B >= 2 (even split across the two
    # v7x TensorCores), capped so the batch-blocked pooling matrices and the
    # unrolled tap loop keep a small VMEM / vreg footprint.
    BB = 1 if B < 2 else min((B + 1) // 2, 8)
    G = -(-B // BB)
    B_pad = G * BB

    slab, layout, ks = prepare_operands(params, cfg, BB)
    kmax = ks[0]
    Wl = BB * T

    x3 = jnp.asarray(x_nchw, jnp.float32)[:, 0]                    # (B, C_e, T)
    if B_pad > B:
        x3 = jnp.concatenate(
            [x3, jnp.zeros((B_pad - B, C_e, T), jnp.float32)], axis=0)
    # lanes = (batch-in-block, time) + kmax zero lanes so every tap shift is a
    # fixed-length static slice
    xg = x3.reshape(G, BB, C_e, T).transpose(0, 2, 1, 3).reshape(G, C_e, Wl)
    xg = jnp.pad(xg, ((0, 0), (0, 0), (0, kmax)))

    dims = dict(num_T=cfg["num_T"], C_e=C_e, BB=BB, T=T,
                num_S=cfg["num_S"], hidden=cfg["hidden"])

    out = pl.pallas_call(
        partial(_tsception_kernel, layout=layout, ks=tuple(ks), dims=dims,
                slope=_LEAKY_SLOPE),
        out_shape=jax.ShapeDtypeStruct((G, nc, BB), jnp.float32),
        grid=(G,),
        in_specs=[
            pl.BlockSpec((None, C_e, Wl + kmax), lambda g: (g, 0, 0)),
            pl.BlockSpec(slab.shape, lambda g: (0, 0)),   # one resident slab
        ],
        out_specs=pl.BlockSpec((None, nc, BB), lambda g: (g, 0, 0)),
        compiler_params=pltpu.CompilerParams(dimension_semantics=("parallel",)),
    )(xg, slab)

    # (G, nc, BB) with batch on lanes -> (B, nc)
    return jnp.transpose(out, (0, 2, 1)).reshape(B_pad, nc)[:B]


# ----------------------------------------------------------------------------
# Pure-XLA reference (mirrors the PyTorch forward, eval semantics)
# ----------------------------------------------------------------------------
def tsception_reference(x, params, cfg):
    hp = jax.lax.Precision.HIGHEST

    def conv_block(y, w, b, stride, pool):
        y = jax.lax.conv_general_dilated(
            y, w, window_strides=stride, padding="VALID",
            dimension_numbers=("NCHW", "OIHW", "NCHW"), precision=hp)
        y = y + b[None, :, None, None]
        y = jnp.where(y > 0, y, _LEAKY_SLOPE * y)
        y = jax.lax.reduce_window(y, jnp.float32(0.0), jax.lax.add,
                                  (1, 1, 1, pool), (1, 1, 1, pool), "VALID") / pool
        return y

    def bn(y, q):
        scale = q["gamma"] / jnp.sqrt(q["var"] + _BN_EPS)
        shift = q["beta"] - q["mean"] * scale
        return y * scale[None, :, None, None] + shift[None, :, None, None]

    half = cfg["C_e"] // 2
    t1 = conv_block(x, params["t1_w"], params["t1_b"], (1, 1), 8)
    t2 = conv_block(x, params["t2_w"], params["t2_b"], (1, 1), 8)
    t3 = conv_block(x, params["t3_w"], params["t3_b"], (1, 1), 8)
    out = jnp.concatenate([t1, t2, t3], axis=-1)
    out = bn(out, params["bn_t"])
    s1 = conv_block(out, params["s1_w"], params["s1_b"], (1, 1), 2)
    s2 = conv_block(out, params["s2_w"], params["s2_b"], (half, 1), 2)
    out_ = jnp.concatenate([s1, s2], axis=2)
    out_ = bn(out_, params["bn_s"])
    f = conv_block(out_, params["f_w"], params["f_b"], (1, 1), 4)
    f = bn(f, params["bn_f"])
    feat = jnp.mean(f, axis=-1)[:, :, 0]                   # (B, num_S)
    h = jnp.maximum(jnp.dot(feat, params["fc1_w"].T, precision=hp) + params["fc1_b"], 0.0)
    return jnp.dot(h, params["fc2_w"].T, precision=hp) + params["fc2_b"]


# ----------------------------------------------------------------------------
# Deterministic parameter initialization (PyTorch-layout arrays)
# ----------------------------------------------------------------------------
def init_params(key, cfg):
    C_e, sr = cfg["C_e"], cfg["sampling_rate"]
    num_T, num_S = cfg["num_T"], cfg["num_S"]
    hidden, num_classes = cfg["hidden"], cfg["num_classes"]
    ks = [int(w * sr) for w in (0.5, 0.25, 0.125)]
    half = C_e // 2
    keys = iter(jax.random.split(key, 64))

    def uw(shape):                      # kaiming-uniform-like: U(+-1/sqrt(fan_in))
        fan_in = int(np.prod(shape[1:]))
        bound = 1.0 / np.sqrt(fan_in)
        return jax.random.uniform(next(keys), shape, jnp.float32, -bound, bound)

    def ub(n, fan_in):
        bound = 1.0 / np.sqrt(fan_in)
        return jax.random.uniform(next(keys), (n,), jnp.float32, -bound, bound)

    def bn(c):                          # non-trivial running stats to exercise folding
        return dict(
            gamma=jax.random.uniform(next(keys), (c,), jnp.float32, 0.8, 1.2),
            beta=0.1 * jax.random.normal(next(keys), (c,), jnp.float32),
            mean=0.1 * jax.random.normal(next(keys), (c,), jnp.float32),
            var=jax.random.uniform(next(keys), (c,), jnp.float32, 0.8, 1.2),
        )

    p = {}
    for i, k in enumerate(ks):
        p[f"t{i+1}_w"] = uw((num_T, 1, 1, k))
        p[f"t{i+1}_b"] = ub(num_T, k)
    p["s1_w"] = uw((num_S, num_T, C_e, 1)); p["s1_b"] = ub(num_S, num_T * C_e)
    p["s2_w"] = uw((num_S, num_T, half, 1)); p["s2_b"] = ub(num_S, num_T * half)
    p["f_w"] = uw((num_S, num_S, 3, 1)); p["f_b"] = ub(num_S, num_S * 3)
    p["bn_t"] = bn(num_T); p["bn_s"] = bn(num_S); p["bn_f"] = bn(num_S)
    p["fc1_w"] = uw((hidden, num_S)); p["fc1_b"] = ub(hidden, num_S)
    p["fc2_w"] = uw((num_classes, hidden)); p["fc2_b"] = ub(num_classes, hidden)
    return p


# ----------------------------------------------------------------------------
# main
# ----------------------------------------------------------------------------
if __name__ == "__main__":
    cfg = dict(
        batch=2,
        num_classes=2,
        C_e=4,               # input_size = (1, C_e, T): EEG electrode channels
        T=64,                # time samples
        sampling_rate=32,    # -> Tception kernels (1,16), (1,8), (1,4)
        num_T=8,
        num_S=8,
        hidden=32,
        dropout_rate=0.5,    # identity under eval semantics
    )

    key = jax.random.PRNGKey(0)
    pkey, xkey = jax.random.split(key)
    params = init_params(pkey, cfg)
    x = jax.random.normal(
        xkey, (cfg["batch"], 1, cfg["C_e"], cfg["T"]), jnp.float32)  # NCHW

    out = tsception_forward(x, params, cfg)
    out = jax.block_until_ready(out)
    assert out.shape == (cfg["batch"], cfg["num_classes"])
    assert bool(jnp.all(jnp.isfinite(out)))

    ref = jax.block_until_ready(tsception_reference(x, params, cfg))
    max_err = float(jnp.max(jnp.abs(out - ref)))
    assert max_err < 2e-3, f"mismatch vs XLA reference: {max_err}"
    print("KERNEL_OK")
</pallas_src>

<mosaic_0001>
module attributes {stable_mosaic.version = 11 : i64} {
  func.func @_tsception_kernel(%arg0: i32, %arg1: memref<1x4x80xf32, #tpu.memory_space<vmem>>, %arg2: memref<336x33xf32, #tpu.memory_space<vmem>>, %arg3: memref<1x2x1xf32, #tpu.memory_space<vmem>>) attributes {dimension_semantics = [#tpu.dimension_semantics<parallel>], iteration_bounds = array<i64: 2>, scalar_prefetch = 0 : i64, scratch_operands = 0 : i64, tpu.core_type = #tpu.core_type<tc>, window_params = [{transform_indices = @transform_0, window_bounds = array<i64: 1, 4, 80>}, {pipeline_mode = #tpu.pipeline_mode<synchronous>, transform_indices = @transform_1, window_bounds = array<i64: 336, 33>}, {transform_indices = @transform_2, window_bounds = array<i64: 1, 2, 1>}]} {
    %c0 = arith.constant 0 : index
    %c0_0 = arith.constant 0 : index
    %c0_1 = arith.constant 0 : index
    %0 = vector.load %arg1[%c0, %c0_0, %c0_1] : memref<1x4x80xf32, #tpu.memory_space<vmem>>, vector<1x4x80xf32>
    %1 = vector.shape_cast %0 : vector<1x4x80xf32> to vector<4x80xf32>
    %2 = tpu.concatenate %1, %1, %1, %1, %1, %1, %1, %1 in 0 : vector<4x80xf32>, vector<4x80xf32>, vector<4x80xf32>, vector<4x80xf32>, vector<4x80xf32>, vector<4x80xf32>, vector<4x80xf32>, vector<4x80xf32> -> vector<32x80xf32>
    %c0_2 = arith.constant 0 : index
    %c0_3 = arith.constant 0 : index
    %3 = vector.load %arg2[%c0_2, %c0_3] : memref<336x33xf32, #tpu.memory_space<vmem>>, vector<32x31xf32>
    %4 = vector.extract_strided_slice %3 {offsets = [0, 0], sizes = [32, 16], strides = [1, 1]} : vector<32x31xf32> to vector<32x16xf32>
    %5 = vector.extract_strided_slice %3 {offsets = [0, 16], sizes = [32, 1], strides = [1, 1]} : vector<32x31xf32> to vector<32x1xf32>
    %6 = vector.extract_strided_slice %3 {offsets = [0, 17], sizes = [32, 8], strides = [1, 1]} : vector<32x31xf32> to vector<32x8xf32>
    %7 = vector.extract_strided_slice %3 {offsets = [0, 25], sizes = [32, 1], strides = [1, 1]} : vector<32x31xf32> to vector<32x1xf32>
    %8 = vector.extract_strided_slice %3 {offsets = [0, 26], sizes = [32, 4], strides = [1, 1]} : vector<32x31xf32> to vector<32x4xf32>
    %9 = vector.extract_strided_slice %3 {offsets = [0, 30], sizes = [32, 1], strides = [1, 1]} : vector<32x31xf32> to vector<32x1xf32>
    %10 = vector.extract_strided_slice %2 {offsets = [0, 0], sizes = [32, 64], strides = [1, 1]} : vector<32x80xf32> to vector<32x64xf32>
    %11 = vector.extract_strided_slice %4 {offsets = [0, 0], sizes = [32, 1], strides = [1, 1]} : vector<32x16xf32> to vector<32x1xf32>
    %12 = vector.broadcast %11 : vector<32x1xf32> to vector<32x64xf32>
    %13 = arith.mulf %12, %10 : vector<32x64xf32>
    %14 = vector.extract_strided_slice %6 {offsets = [0, 0], sizes = [32, 1], strides = [1, 1]} : vector<32x8xf32> to vector<32x1xf32>
    %15 = vector.broadcast %14 : vector<32x1xf32> to vector<32x64xf32>
    %16 = arith.mulf %15, %10 : vector<32x64xf32>
    %17 = vector.extract_strided_slice %8 {offsets = [0, 0], sizes = [32, 1], strides = [1, 1]} : vector<32x4xf32> to vector<32x1xf32>
    %18 = vector.broadcast %17 : vector<32x1xf32> to vector<32x64xf32>
    %19 = arith.mulf %18, %10 : vector<32x64xf32>
    %20 = vector.extract_strided_slice %2 {offsets = [0, 1], sizes = [32, 64], strides = [1, 1]} : vector<32x80xf32> to vector<32x64xf32>
    %21 = vector.extract_strided_slice %4 {offsets = [0, 1], sizes = [32, 1], strides = [1, 1]} : vector<32x16xf32> to vector<32x1xf32>
    %22 = vector.broadcast %21 : vector<32x1xf32> to vector<32x64xf32>
    %23 = arith.mulf %22, %20 : vector<32x64xf32>
    %24 = arith.addf %13, %23 : vector<32x64xf32>
    %25 = vector.extract_strided_slice %6 {offsets = [0, 1], sizes = [32, 1], strides = [1, 1]} : vector<32x8xf32> to vector<32x1xf32>
    %26 = vector.broadcast %25 : vector<32x1xf32> to vector<32x64xf32>
    %27 = arith.mulf %26, %20 : vector<32x64xf32>
    %28 = arith.addf %16, %27 : vector<32x64xf32>
    %29 = vector.extract_strided_slice %8 {offsets = [0, 1], sizes = [32, 1], strides = [1, 1]} : vector<32x4xf32> to vector<32x1xf32>
    %30 = vector.broadcast %29 : vector<32x1xf32> to vector<32x64xf32>
    %31 = arith.mulf %30, %20 : vector<32x64xf32>
    %32 = arith.addf %19, %31 : vector<32x64xf32>
    %33 = vector.extract_strided_slice %2 {offsets = [0, 2], sizes = [32, 64], strides = [1, 1]} : vector<32x80xf32> to vector<32x64xf32>
    %34 = vector.extract_strided_slice %4 {offsets = [0, 2], sizes = [32, 1], strides = [1, 1]} : vector<32x16xf32> to vector<32x1xf32>
    %35 = vector.broadcast %34 : vector<32x1xf32> to vector<32x64xf32>
    %36 = arith.mulf %35, %33 : vector<32x64xf32>
    %37 = arith.addf %24, %36 : vector<32x64xf32>
    %38 = vector.extract_strided_slice %6 {offsets = [0, 2], sizes = [32, 1], strides = [1, 1]} : vector<32x8xf32> to vector<32x1xf32>
    %39 = vector.broadcast %38 : vector<32x1xf32> to vector<32x64xf32>
    %40 = arith.mulf %39, %33 : vector<32x64xf32>
    %41 = arith.addf %28, %40 : vector<32x64xf32>
    %42 = vector.extract_strided_slice %8 {offsets = [0, 2], sizes = [32, 1], strides = [1, 1]} : vector<32x4xf32> to vector<32x1xf32>
    %43 = vector.broadcast %42 : vector<32x1xf32> to vector<32x64xf32>
    %44 = arith.mulf %43, %33 : vector<32x64xf32>
    %45 = arith.addf %32, %44 : vector<32x64xf32>
    %46 = vector.extract_strided_slice %2 {offsets = [0, 3], sizes = [32, 64], strides = [1, 1]} : vector<32x80xf32> to vector<32x64xf32>
    %47 = vector.extract_strided_slice %4 {offsets = [0, 3], sizes = [32, 1], strides = [1, 1]} : vector<32x16xf32> to vector<32x1xf32>
    %48 = vector.broadcast %47 : vector<32x1xf32> to vector<32x64xf32>
    %49 = arith.mulf %48, %46 : vector<32x64xf32>
    %50 = arith.addf %37, %49 : vector<32x64xf32>
    %51 = vector.extract_strided_slice %6 {offsets = [0, 3], sizes = [32, 1], strides = [1, 1]} : vector<32x8xf32> to vector<32x1xf32>
    %52 = vector.broadcast %51 : vector<32x1xf32> to vector<32x64xf32>
    %53 = arith.mulf %52, %46 : vector<32x64xf32>
    %54 = arith.addf %41, %53 : vector<32x64xf32>
    %55 = vector.extract_strided_slice %8 {offsets = [0, 3], sizes = [32, 1], strides = [1, 1]} : vector<32x4xf32> to vector<32x1xf32>
    %56 = vector.broadcast %55 : vector<32x1xf32> to vector<32x64xf32>
    %57 = arith.mulf %56, %46 : vector<32x64xf32>
    %58 = arith.addf %45, %57 : vector<32x64xf32>
    %59 = vector.extract_strided_slice %2 {offsets = [0, 4], sizes = [32, 64], strides = [1, 1]} : vector<32x80xf32> to vector<32x64xf32>
    %60 = vector.extract_strided_slice %4 {offsets = [0, 4], sizes = [32, 1], strides = [1, 1]} : vector<32x16xf32> to vector<32x1xf32>
    %61 = vector.broadcast %60 : vector<32x1xf32> to vector<32x64xf32>
    %62 = arith.mulf %61, %59 : vector<32x64xf32>
    %63 = arith.addf %50, %62 : vector<32x64xf32>
    %64 = vector.extract_strided_slice %6 {offsets = [0, 4], sizes = [32, 1], strides = [1, 1]} : vector<32x8xf32> to vector<32x1xf32>
    %65 = vector.broadcast %64 : vector<32x1xf32> to vector<32x64xf32>
    %66 = arith.mulf %65, %59 : vector<32x64xf32>
    %67 = arith.addf %54, %66 : vector<32x64xf32>
    %68 = vector.extract_strided_slice %2 {offsets = [0, 5], sizes = [32, 64], strides = [1, 1]} : vector<32x80xf32> to vector<32x64xf32>
    %69 = vector.extract_strided_slice %4 {offsets = [0, 5], sizes = [32, 1], strides = [1, 1]} : vector<32x16xf32> to vector<32x1xf32>
    %70 = vector.broadcast %69 : vector<32x1xf32> to vector<32x64xf32>
    %71 = arith.mulf %70, %68 : vector<32x64xf32>
    %72 = arith.addf %63, %71 : vector<32x64xf32>
    %73 = vector.extract_strided_slice %6 {offsets = [0, 5], sizes = [32, 1], strides = [1, 1]} : vector<32x8xf32> to vector<32x1xf32>
    %74 = vector.broadcast %73 : vector<32x1xf32> to vector<32x64xf32>
    %75 = arith.mulf %74, %68 : vector<32x64xf32>
    %76 = arith.addf %67, %75 : vector<32x64xf32>
    %77 = vector.extract_strided_slice %2 {offsets = [0, 6], sizes = [32, 64], strides = [1, 1]} : vector<32x80xf32> to vector<32x64xf32>
    %78 = vector.extract_strided_slice %4 {offsets = [0, 6], sizes = [32, 1], strides = [1, 1]} : vector<32x16xf32> to vector<32x1xf32>
    %79 = vector.broadcast %78 : vector<32x1xf32> to vector<32x64xf32>
    %80 = arith.mulf %79, %77 : vector<32x64xf32>
    %81 = arith.addf %72, %80 : vector<32x64xf32>
    %82 = vector.extract_strided_slice %6 {offsets = [0, 6], sizes = [32, 1], strides = [1, 1]} : vector<32x8xf32> to vector<32x1xf32>
    %83 = vector.broadcast %82 : vector<32x1xf32> to vector<32x64xf32>
    %84 = arith.mulf %83, %77 : vector<32x64xf32>
    %85 = arith.addf %76, %84 : vector<32x64xf32>
    %86 = vector.extract_strided_slice %2 {offsets = [0, 7], sizes = [32, 64], strides = [1, 1]} : vector<32x80xf32> to vector<32x64xf32>
    %87 = vector.extract_strided_slice %4 {offsets = [0, 7], sizes = [32, 1], strides = [1, 1]} : vector<32x16xf32> to vector<32x1xf32>
    %88 = vector.broadcast %87 : vector<32x1xf32> to vector<32x64xf32>
    %89 = arith.mulf %88, %86 : vector<32x64xf32>
    %90 = arith.addf %81, %89 : vector<32x64xf32>
    %91 = vector.extract_strided_slice %6 {offsets = [0, 7], sizes = [32, 1], strides = [1, 1]} : vector<32x8xf32> to vector<32x1xf32>
    %92 = vector.broadcast %91 : vector<32x1xf32> to vector<32x64xf32>
    %93 = arith.mulf %92, %86 : vector<32x64xf32>
    %94 = arith.addf %85, %93 : vector<32x64xf32>
    %95 = vector.extract_strided_slice %2 {offsets = [0, 8], sizes = [32, 64], strides = [1, 1]} : vector<32x80xf32> to vector<32x64xf32>
    %96 = vector.extract_strided_slice %4 {offsets = [0, 8], sizes = [32, 1], strides = [1, 1]} : vector<32x16xf32> to vector<32x1xf32>
    %97 = vector.broadcast %96 : vector<32x1xf32> to vector<32x64xf32>
    %98 = arith.mulf %97, %95 : vector<32x64xf32>
    %99 = arith.addf %90, %98 : vector<32x64xf32>
    %100 = vector.extract_strided_slice %2 {offsets = [0, 9], sizes = [32, 64], strides = [1, 1]} : vector<32x80xf32> to vector<32x64xf32>
    %101 = vector.extract_strided_slice %4 {offsets = [0, 9], sizes = [32, 1], strides = [1, 1]} : vector<32x16xf32> to vector<32x1xf32>
    %102 = vector.broadcast %101 : vector<32x1xf32> to vector<32x64xf32>
    %103 = arith.mulf %102, %100 : vector<32x64xf32>
    %104 = arith.addf %99, %103 : vector<32x64xf32>
    %105 = vector.extract_strided_slice %2 {offsets = [0, 10], sizes = [32, 64], strides = [1, 1]} : vector<32x80xf32> to vector<32x64xf32>
    %106 = vector.extract_strided_slice %4 {offsets = [0, 10], sizes = [32, 1], strides = [1, 1]} : vector<32x16xf32> to vector<32x1xf32>
    %107 = vector.broadcast %106 : vector<32x1xf32> to vector<32x64xf32>
    %108 = arith.mulf %107, %105 : vector<32x64xf32>
    %109 = arith.addf %104, %108 : vector<32x64xf32>
    %110 = vector.extract_strided_slice %2 {offsets = [0, 11], sizes = [32, 64], strides = [1, 1]} : vector<32x80xf32> to vector<32x64xf32>
    %111 = vector.extract_strided_slice %4 {offsets = [0, 11], sizes = [32, 1], strides = [1, 1]} : vector<32x16xf32> to vector<32x1xf32>
    %112 = vector.broadcast %111 : vector<32x1xf32> to vector<32x64xf32>
    %113 = arith.mulf %112, %110 : vector<32x64xf32>
    %114 = arith.addf %109, %113 : vector<32x64xf32>
    %115 = vector.extract_strided_slice %2 {offsets = [0, 12], sizes = [32, 64], strides = [1, 1]} : vector<32x80xf32> to vector<32x64xf32>
    %116 = vector.extract_strided_slice %4 {offsets = [0, 12], sizes = [32, 1], strides = [1, 1]} : vector<32x16xf32> to vector<32x1xf32>
    %117 = vector.broadcast %116 : vector<32x1xf32> to vector<32x64xf32>
    %118 = arith.mulf %117, %115 : vector<32x64xf32>
    %119 = arith.addf %114, %118 : vector<32x64xf32>
    %120 = vector.extract_strided_slice %2 {offsets = [0, 13], sizes = [32, 64], strides = [1, 1]} : vector<32x80xf32> to vector<32x64xf32>
    %121 = vector.extract_strided_slice %4 {offsets = [0, 13], sizes = [32, 1], strides = [1, 1]} : vector<32x16xf32> to vector<32x1xf32>
    %122 = vector.broadcast %121 : vector<32x1xf32> to vector<32x64xf32>
    %123 = arith.mulf %122, %120 : vector<32x64xf32>
    %124 = arith.addf %119, %123 : vector<32x64xf32>
    %125 = vector.extract_strided_slice %2 {offsets = [0, 14], sizes = [32, 64], strides = [1, 1]} : vector<32x80xf32> to vector<32x64xf32>
    %126 = vector.extract_strided_slice %4 {offsets = [0, 14], sizes = [32, 1], strides = [1, 1]} : vector<32x16xf32> to vector<32x1xf32>
    %127 = vector.broadcast %126 : vector<32x1xf32> to vector<32x64xf32>
    %128 = arith.mulf %127, %125 : vector<32x64xf32>
    %129 = arith.addf %124, %128 : vector<32x64xf32>
    %130 = vector.extract_strided_slice %2 {offsets = [0, 15], sizes = [32, 64], strides = [1, 1]} : vector<32x80xf32> to vector<32x64xf32>
    %131 = vector.extract_strided_slice %4 {offsets = [0, 15], sizes = [32, 1], strides = [1, 1]} : vector<32x16xf32> to vector<32x1xf32>
    %132 = vector.broadcast %131 : vector<32x1xf32> to vector<32x64xf32>
    %133 = arith.mulf %132, %130 : vector<32x64xf32>
    %134 = arith.addf %129, %133 : vector<32x64xf32>
    %135 = vector.broadcast %5 : vector<32x1xf32> to vector<32x64xf32>
    %136 = arith.addf %134, %135 : vector<32x64xf32>
    %cst = arith.constant 0.000000e+00 : f32
    %137 = vector.broadcast %cst : f32 to vector<32x64xf32>
    %138 = arith.cmpf ogt, %136, %137 : vector<32x64xf32>
    %cst_4 = arith.constant 0.00999999977 : f32
    %139 = vector.broadcast %cst_4 : f32 to vector<32x64xf32>
    %140 = arith.mulf %139, %136 : vector<32x64xf32>
    %141 = arith.select %138, %136, %140 : vector<32x64xi1>, vector<32x64xf32>
    %142 = vector.broadcast %7 : vector<32x1xf32> to vector<32x64xf32>
    %143 = arith.addf %94, %142 : vector<32x64xf32>
    %cst_5 = arith.constant 0.000000e+00 : f32
    %144 = vector.broadcast %cst_5 : f32 to vector<32x64xf32>
    %145 = arith.cmpf ogt, %143, %144 : vector<32x64xf32>
    %cst_6 = arith.constant 0.00999999977 : f32
    %146 = vector.broadcast %cst_6 : f32 to vector<32x64xf32>
    %147 = arith.mulf %146, %143 : vector<32x64xf32>
    %148 = arith.select %145, %143, %147 : vector<32x64xi1>, vector<32x64xf32>
    %149 = vector.broadcast %9 : vector<32x1xf32> to vector<32x64xf32>
    %150 = arith.addf %58, %149 : vector<32x64xf32>
    %cst_7 = arith.constant 0.000000e+00 : f32
    %151 = vector.broadcast %cst_7 : f32 to vector<32x64xf32>
    %152 = arith.cmpf ogt, %150, %151 : vector<32x64xf32>
    %cst_8 = arith.constant 0.00999999977 : f32
    %153 = vector.broadcast %cst_8 : f32 to vector<32x64xf32>
    %154 = arith.mulf %153, %150 : vector<32x64xf32>
    %155 = arith.select %152, %150, %154 : vector<32x64xi1>, vector<32x64xf32>
    %156 = tpu.concatenate %141, %148, %155 in 1 : vector<32x64xf32>, vector<32x64xf32>, vector<32x64xf32> -> vector<32x192xf32>
    %c32 = arith.constant 32 : index
    %c0_9 = arith.constant 0 : index
    %157 = vector.load %arg2[%c32, %c0_9] : memref<336x33xf32, #tpu.memory_space<vmem>>, vector<192x20xf32>
    %cst_10 = arith.constant dense<0.000000e+00> : vector<32x20xf32>
    %158 = tpu.matmul %156, %157, %cst_10 {dimension_numbers = #tpu.dot_dimension_numbers<[1], [0], [0], [1], [0, 0, 1, 1], [], []>} : vector<32x192xf32>, vector<192x20xf32>, vector<32x20xf32> -> vector<32x20xf32>
    %c224 = arith.constant 224 : index
    %c0_11 = arith.constant 0 : index
    %159 = vector.load %arg2[%c224, %c0_11] : memref<336x33xf32, #tpu.memory_space<vmem>>, vector<24x33xf32>
    %160 = vector.extract_strided_slice %159 {offsets = [0, 0], sizes = [24, 32], strides = [1, 1]} : vector<24x33xf32> to vector<24x32xf32>
    %cst_12 = arith.constant dense<0.000000e+00> : vector<24x20xf32>
    %161 = tpu.matmul %160, %158, %cst_12 {dimension_numbers = #tpu.dot_dimension_numbers<[1], [0], [0], [1], [0, 0, 1, 1], [], []>} : vector<24x32xf32>, vector<32x20xf32>, vector<24x20xf32> -> vector<24x20xf32>
    %162 = vector.extract_strided_slice %159 {offsets = [0, 32], sizes = [24, 1], strides = [1, 1]} : vector<24x33xf32> to vector<24x1xf32>
    %163 = vector.broadcast %162 : vector<24x1xf32> to vector<24x20xf32>
    %164 = arith.addf %161, %163 : vector<24x20xf32>
    %cst_13 = arith.constant 0.000000e+00 : f32
    %165 = vector.broadcast %cst_13 : f32 to vector<24x20xf32>
    %166 = arith.cmpf ogt, %164, %165 : vector<24x20xf32>
    %cst_14 = arith.constant 0.00999999977 : f32
    %167 = vector.broadcast %cst_14 : f32 to vector<24x20xf32>
    %168 = arith.mulf %167, %164 : vector<24x20xf32>
    %169 = arith.select %166, %164, %168 : vector<24x20xi1>, vector<24x20xf32>
    %c248 = arith.constant 248 : index
    %c0_15 = arith.constant 0 : index
    %170 = vector.load %arg2[%c248, %c0_15] : memref<336x33xf32, #tpu.memory_space<vmem>>, vector<20x10xf32>
    %cst_16 = arith.constant dense<0.000000e+00> : vector<24x10xf32>
    %171 = tpu.matmul %169, %170, %cst_16 {dimension_numbers = #tpu.dot_dimension_numbers<[1], [0], [0], [1], [0, 0, 1, 1], [], []>} : vector<24x20xf32>, vector<20x10xf32>, vector<24x10xf32> -> vector<24x10xf32>
    %c272 = arith.constant 272 : index
    %c0_17 = arith.constant 0 : index
    %172 = vector.load %arg2[%c272, %c0_17] : memref<336x33xf32, #tpu.memory_space<vmem>>, vector<8x25xf32>
    %173 = vector.extract_strided_slice %172 {offsets = [0, 0], sizes = [8, 24], strides = [1, 1]} : vector<8x25xf32> to vector<8x24xf32>
    %cst_18 = arith.constant dense<0.000000e+00> : vector<8x10xf32>
    %174 = tpu.matmul %173, %171, %cst_18 {dimension_numbers = #tpu.dot_dimension_numbers<[1], [0], [0], [1], [0, 0, 1, 1], [], []>} : vector<8x24xf32>, vector<24x10xf32>, vector<8x10xf32> -> vector<8x10xf32>
    %175 = vector.extract_strided_slice %172 {offsets = [0, 24], sizes = [8, 1], strides = [1, 1]} : vector<8x25xf32> to vector<8x1xf32>
    %176 = vector.broadcast %175 : vector<8x1xf32> to vector<8x10xf32>
    %177 = arith.addf %174, %176 : vector<8x10xf32>
    %cst_19 = arith.constant 0.000000e+00 : f32
    %178 = vector.broadcast %cst_19 : f32 to vector<8x10xf32>
    %179 = arith.cmpf ogt, %177, %178 : vector<8x10xf32>
    %cst_20 = arith.constant 0.00999999977 : f32
    %180 = vector.broadcast %cst_20 : f32 to vector<8x10xf32>
    %181 = arith.mulf %180, %177 : vector<8x10xf32>
    %182 = arith.select %179, %177, %181 : vector<8x10xi1>, vector<8x10xf32>
    %c280 = arith.constant 280 : index
    %c0_21 = arith.constant 0 : index
    %183 = vector.load %arg2[%c280, %c0_21] : memref<336x33xf32, #tpu.memory_space<vmem>>, vector<10x1xf32>
    %cst_22 = arith.constant dense<0.000000e+00> : vector<8x1xf32>
    %184 = tpu.matmul %182, %183, %cst_22 {dimension_numbers = #tpu.dot_dimension_numbers<[1], [0], [0], [1], [0, 0, 1, 1], [], []>} : vector<8x10xf32>, vector<10x1xf32>, vector<8x1xf32> -> vector<8x1xf32>
    %c296 = arith.constant 296 : index
    %c0_23 = arith.constant 0 : index
    %185 = vector.load %arg2[%c296, %c0_23] : memref<336x33xf32, #tpu.memory_space<vmem>>, vector<32x9xf32>
    %186 = vector.extract_strided_slice %185 {offsets = [0, 0], sizes = [32, 8], strides = [1, 1]} : vector<32x9xf32> to vector<32x8xf32>
    %cst_24 = arith.constant dense<0.000000e+00> : vector<32x1xf32>
    %187 = tpu.matmul %186, %184, %cst_24 {dimension_numbers = #tpu.dot_dimension_numbers<[1], [0], [0], [1], [0, 0, 1, 1], [], []>} : vector<32x8xf32>, vector<8x1xf32>, vector<32x1xf32> -> vector<32x1xf32>
    %188 = vector.extract_strided_slice %185 {offsets = [0, 8], sizes = [32, 1], strides = [1, 1]} : vector<32x9xf32> to vector<32x1xf32>
    %189 = arith.addf %187, %188 : vector<32x1xf32>
    %cst_25 = arith.constant 0.000000e+00 : f32
    %190 = vector.broadcast %cst_25 : f32 to vector<32x1xf32>
    %191 = arith.maximumf %189, %190 : vector<32x1xf32>
    %c328 = arith.constant 328 : index
    %c0_26 = arith.constant 0 : index
    %192 = vector.load %arg2[%c328, %c0_26] : memref<336x33xf32, #tpu.memory_space<vmem>>, vector<2x33xf32>
    %193 = vector.extract_strided_slice %192 {offsets = [0, 0], sizes = [2, 32], strides = [1, 1]} : vector<2x33xf32> to vector<2x32xf32>
    %cst_27 = arith.constant dense<0.000000e+00> : vector<2x1xf32>
    %194 = tpu.matmul %193, %191, %cst_27 {dimension_numbers = #tpu.dot_dimension_numbers<[1], [0], [0], [1], [0, 0, 1, 1], [], []>} : vector<2x32xf32>, vector<32x1xf32>, vector<2x1xf32> -> vector<2x1xf32>
    %195 = vector.extract_strided_slice %192 {offsets = [0, 32], sizes = [2, 1], strides = [1, 1]} : vector<2x33xf32> to vector<2x1xf32>
    %196 = arith.addf %194, %195 : vector<2x1xf32>
    %c0_28 = arith.constant 0 : index
    %c0_29 = arith.constant 0 : index
    %c0_30 = arith.constant 0 : index
    %197 = vector.load %arg3[%c0_28, %c0_29, %c0_30] : memref<1x2x1xf32, #tpu.memory_space<vmem>>, vector<1x2x1xf32>
    %198 = vector.shape_cast %197 : vector<1x2x1xf32> to vector<2x1xf32>
    %199 = vector.shape_cast %196 : vector<2x1xf32> to vector<1x2x1xf32>
    tpu.vector_store %arg3[%c0_28, %c0_29, %c0_30], %199 {strides = array<i32>} : memref<1x2x1xf32, #tpu.memory_space<vmem>>, vector<1x2x1xf32>,
    return
  }
  func.func @transform_0(%arg0: i32) -> (i32, i32, i32) {
    %c0_i32 = arith.constant 0 : i32
    %c0_i32_0 = arith.constant 0 : i32
    %c0_i32_1 = arith.constant 0 : i32
    return %arg0, %c0_i32, %c0_i32_0 : i32, i32, i32
  }
  func.func @transform_1(%arg0: i32) -> (i32, i32) {
    %c0_i32 = arith.constant 0 : i32
    %c0_i32_0 = arith.constant 0 : i32
    %c0_i32_1 = arith.constant 0 : i32
    return %c0_i32, %c0_i32_0 : i32, i32
  }
  func.func @transform_2(%arg0: i32) -> (i32, i32, i32) {
    %c0_i32 = arith.constant 0 : i32
    %c0_i32_0 = arith.constant 0 : i32
    %c0_i32_1 = arith.constant 0 : i32
    return %arg0, %c0_i32, %c0_i32_0 : i32, i32, i32
  }
}

</mosaic_0001>

<bundles_post_ra>
// kernel: tpu_custom_call.1
= control target key start
LH: loop header
LB: loop body
LE: loop exit
PB: predicated region body
PF: predicated region fallthrough
CT: control target
= control target key end

     0   :  { %s2444_s9 = smov 0   ;;  %s3446_s0 = inlined_call_operand.vmem [shape: f32[2,4,80], index: 0, kind: input, shape index: {}]   ;;  %s3447_s1 = inlined_call_operand.vmem [shape: f32[336,33], index: 1, kind: input, shape index: {}]   ;;  %s3448_s2 = inlined_call_operand.vmem [shape: f32[2,2,1], index: 2, kind: output, shape index: {}]  }
   0x1 LB: > { %s2073_s10 = sadd.s32 4294967295, %s2376_s9   ;;  %p2077_p0 = scmp.ge.s32.totalorder %s2376_s9, 1  ;;  %s2376_s9 = sphi %s2444_s9, %s12_s9  }
   0x2   : > { %p111_p1 = scmp.lt.s32.totalorder %s2376_s9, 3 }
   0x4   : > { %p112_p2 = pnand %p2077_p0, %p111_p1 }
   0x6   : > { %115 = sbr.rel (%p112_p2) target bundleno = 2139 (0x85b), region = 28 }
   0xb   : > { %v2455_v0 = vld [vmem:[%s3447_s1 + $0x8] sm:$0xff]  ;;  %v2460_v1 = vld [vmem:[%s3447_s1] sm:$0xff]  ;;  %v2378_v2 = vmov 18   ;;  %v2379_v3 = vmov 20   ;;  %v2380_v4 = vmov 19   ;;  %v2381_v5 = vmov 21  }
   0xc   : > { %2259 = vset.pattern.permute.xlu1 %v2378_v2  ;;  %2257 = vset.pattern.permute.xlu0 %v2378_v2  ;;  %v2471_v6 = vld [vmem:[%s3447_s1 + $0x10] sm:$0xff]  ;;  %v2382_v7 = vmov 22   ;;  %v2383_v8 = vmov 23   ;;  %v2484_v9 = vld [vmem:[%s3447_s1 + $0x18] sm:$0xff]  ;;  %v3449_v10 = vmov 24   ;;  %v2385_v11 = vmov 2  }
   0xd   : > { %258 = vperm.xlu1 %2259, %v2455_v0   ;;  %254 = vperm.xlu0 %2257, %v2460_v1   ;;  %v2386_v12 = vmov 1   ;;  %v2387_v13 = vmov 7   ;;  %v2388_v14 = vmov 6   ;;  %v2389_v15 = vmov 3   ;;  %p131_p3 = scmp.lt.s32.totalorder %s2073_s10, 1  ;;  %s2395_s23 = smov 126  }
   0xe   : > { %v2390_v16 = vmov 5   ;;  %v2391_v17 = vmov 11   ;;  %v2392_v18 = vmov 10   ;;  %v2393_v19 = vmov 8   ;;  %s2399_s24 = smov 123   ;;  %s2401_s25 = smov 124  }
   0xf   : > { %v2394_v20 = vmov 4   ;;  %s3458_s10 = smov (!%p131_p3, %s2073_s10), 1  ;;  %vm143_vm0 = vcmask 1043456   ;;  %v2396_v31 = vmov 17   ;;  %v2397_v34 = vmov 9   ;;  %s2402_s26 = smov 127  }
  0x10   : > { %s2078_s19 = sshll.u32 %s3458_s10, 2  ;;  %v2398_v39 = vmov 14   ;;  %v2400_v45 = vmov 27   ;;  %v2403_v56 = vmov 15   ;;  %v2404_v62 = vmov 28   ;;  %s2410_s27 = smov 125  }
  0x11   : > { %2260 = vset.pattern.permute.xlu1 %v2379_v3  ;;  %2258 = vset.pattern.permute.xlu0 %v2380_v4  ;;  %s134_s22 = scalar_lea.vmem %s3446_s0, %s2078_s19  ;;  %s2412_s28 = smov 122   ;;  %vm1325_vm6 = vcmask 523264   ;;  %vm2426_vm14 = vmmov 0   ;;  %vm1469_vm15 = vcmask 261120  }
  0x12   : > { %494 = vperm.xlu1 %2260, %v2460_v1   ;;  %374 = vperm.xlu0 %2258, %v2460_v1   ;;  %v139_v21 = vld [vmem:[%s134_s22] sm:$0xf]  ;;  %s2413_s29 = smov 121   ;;  %s2414_s30 = smov 120  }
  0x13   : > { %v141_v24 = vrot.slane %v139_v21, 4  ;;  %s2415_s3 = smov 119   ;;  %s2416_s4 = smov 118  }
  0x14   : > { %s2417_s5 = smov 115   ;;  %s2418_s6 = smov 116  }
  0x15   : > { %v2551_v25 = vsel %vm143_vm0, %v139_v21, %v141_v24  ;;  %s2420_s7 = smov 117   ;;  %s2421_s8 = smov 113  }
  0x16   : > { %2261 = vset.pattern.permute.xlu1 %v2380_v4  ;;  %2262 = vset.pattern.permute.xlu0 %v2381_v5  ;;  %s2423_s11 = smov 114   ;;  %s2425_s12 = smov 64  }
  0x17   : > { %378 = vperm.xlu1 %2261, %v2455_v0   ;;  %614 = vperm.xlu0 %2262, %v2460_v1  }
  0x1b   : > { %2263 = vset.pattern.permute.xlu1 %v2378_v2  ;;  %622 = vperm.xlu0 %2262, %v2471_v6  }
  0x1c   : > { %262 = vperm.xlu1 %2263, %v2471_v6  }
  0x1f   : > { %2271 = vset.pattern.permute.xlu0 %v2382_v7 }
  0x20   : > { %2264 = vset.pattern.permute.xlu1 %v2379_v3  ;;  %694 = vperm.xlu0 %2271, %v2460_v1  }
  0x21   : > { %498 = vperm.xlu1 %2264, %v2455_v0  }
  0x24   : > { %698 = vperm.xlu0 %2271, %v2455_v0  }
  0x25   : > { %2265 = vset.pattern.permute.xlu1 %v2380_v4 }
  0x26   : > { %382 = vperm.xlu1 %2265, %v2471_v6  }
  0x28   : > { %702 = vperm.xlu0 %2271, %v2471_v6  }
  0x2a   : > { %2266 = vset.pattern.permute.xlu1 %v2381_v5 }
  0x2b   : > { %618 = vperm.xlu1 %2266, %v2455_v0  }
  0x2c   : > { %2274 = vset.pattern.permute.xlu0 %v2383_v8 }
  0x2d   : > { %774 = vperm.xlu0 %2274, %v2460_v1  }
  0x2f   : > { %2267 = vset.pattern.permute.xlu1 %v2378_v2 }
  0x30   : > { %266 = vperm.xlu1 %2267, %v2484_v9  }
  0x31   : > { %782 = vperm.xlu0 %2274, %v2471_v6  }
  0x34   : > { %2268 = vset.pattern.permute.xlu1 %v2379_v3 }
  0x35   : > { %502 = vperm.xlu1 %2268, %v2471_v6   ;;  %786 = vperm.xlu0 %2274, %v2484_v9  }
  0x39   : > { %2269 = vset.pattern.permute.xlu1 %v3449_v10  ;;  %2285 = vset.pattern.permute.xlu0 %v2385_v11 }
  0x3a   : > { %854 = vperm.xlu1 %2269, %v2460_v1   ;;  %342 = vperm.xlu0 %2285, %v2471_v6  }
  0x3e   : > { %2270 = vset.pattern.permute.xlu1 %v2380_v4  ;;  %2286 = vset.pattern.permute.xlu0 %v2386_v12  ;;  %v2405_v4 = vmov 12  }
  0x3f   : > { %386 = vperm.xlu1 %2270, %v2484_v9   ;;  %214 = vperm.xlu0 %2286, %v2460_v1  }
  0x43   : > { %2272 = vset.pattern.permute.xlu1 %v2383_v8  ;;  %222 = vperm.xlu0 %2286, %v2471_v6  }
  0x44   : > { %778 = vperm.xlu1 %2272, %v2455_v0  }
  0x47   : > { %226 = vperm.xlu0 %2286, %v2484_v9  }
  0x48   : > { %2273 = vset.pattern.permute.xlu1 %v2379_v3 }
  0x49   : > { %506 = vperm.xlu1 %2273, %v2484_v9  }
  0x4b   : > { %2291 = vset.pattern.permute.xlu0 %v2387_v13 }
  0x4c   : > { %814 = vperm.xlu0 %2291, %v2460_v1  }
  0x4d   : > { %2275 = vset.pattern.permute.xlu1 %v3449_v10 }
  0x4e   : > { %858 = vperm.xlu1 %2275, %v2455_v0  }
  0x50   : > { %2294 = vset.pattern.permute.xlu0 %v2388_v14 }
  0x51   : > { %738 = vperm.xlu0 %2294, %v2455_v0  }
  0x52   : > { %2276 = vset.pattern.permute.xlu1 %v2381_v5 }
  0x53   : > { %626 = vperm.xlu1 %2276, %v2484_v9  }
  0x55   : > { %2295 = vset.pattern.permute.xlu0 %v2389_v15 }
  0x56   : > { %454 = vperm.xlu0 %2295, %v2460_v1  }
  0x57   : > { %2277 = vset.pattern.permute.xlu1 %v2382_v7 }
  0x58   : > { %706 = vperm.xlu1 %2277, %v2484_v9  }
  0x5a   : > { %466 = vperm.xlu0 %2295, %v2484_v9  }
  0x5c   : > { %2278 = vset.pattern.permute.xlu1 %v3449_v10 }
  0x5d   : > { %862 = vperm.xlu1 %2278, %v2471_v6  }
  0x5e   : > { %2304 = vset.pattern.permute.xlu0 %v2390_v16 }
  0x5f   : > { %666 = vperm.xlu0 %2304, %v2484_v9  }
  0x61   : > { %866 = vperm.xlu1 %2278, %v2484_v9  }
  0x63   : > { %2307 = vset.pattern.permute.xlu0 %v2391_v17 }
  0x64   : > { %1014 = vperm.xlu0 %2307, %v2460_v1  }
  0x65   : > { %2279 = vset.pattern.permute.xlu1 %v2385_v11 }
  0x66   : > { %334 = vperm.xlu1 %2279, %v2460_v1  }
  0x68   : > { %2310 = vset.pattern.permute.xlu0 %v2392_v18 }
  0x69   : > { %978 = vperm.xlu0 %2310, %v2455_v0  }
  0x6a   : > { %2280 = vset.pattern.permute.xlu1 %v2386_v12 }
  0x6b   : > { %218 = vperm.xlu1 %2280, %v2455_v0  }
  0x6d   : > { %2311 = vset.pattern.permute.xlu0 %v2393_v19 }
  0x6e   : > { %898 = vperm.xlu0 %2311, %v2455_v0  }
  0x6f   : > { %2281 = vset.pattern.permute.xlu1 %v2385_v11 }
  0x70   : > { %338 = vperm.xlu1 %2281, %v2455_v0  }
  0x74   : > { %2282 = vset.pattern.permute.xlu1 %v2394_v20 }
  0x75   : > { %574 = vperm.xlu1 %2282, %v2460_v1  }
  0x79   : > { %2283 = vset.pattern.permute.xlu1 %v2389_v15 }
  0x7a   : > { %458 = vperm.xlu1 %2283, %v2455_v0  }
  0x7e   : > { %2284 = vset.pattern.permute.xlu1 %v2390_v16 }
  0x7f   : > { %654 = vperm.xlu1 %2284, %v2460_v1  }
  0x83   : > { %2287 = vset.pattern.permute.xlu1 %v2394_v20 }
  0x84   : > { %578 = vperm.xlu1 %2287, %v2455_v0  }
  0x88   : > { %v2544_v22 = vpop.permute.xlu1 %258  ;;  %2288 = vset.pattern.permute.xlu1 %v2388_v14  ;;  %v2547_v23 = vpop.permute.xlu0 %254 }
  0x89   : > { %734 = vperm.xlu1 %2288, %v2460_v1   ;;  %v269_v5 = vmul.f32 %v2547_v23, %v2551_v25 }
  0x8d   : > { %2289 = vset.pattern.permute.xlu1 %v2389_v15  ;;  %v2553_v26 = vpop.permute.xlu1 %494  ;;  %v375_v27 = vpop.permute.xlu0 %374 }
  0x8e   : > { %v389_v28 = vmul.f32 %v375_v27, %v2551_v25  ;;  %462 = vperm.xlu1 %2289, %v2471_v6  }
  0x90   : > { %397 = vrot.lane.b32.xlu0 %v389_v28, %s2395_s23  ;;  %v2408_v28 = vmov 25  }
  0x92   : > { %2290 = vset.pattern.permute.xlu1 %v2390_v16  ;;  %v2559_v29 = vpop.permute.xlu1 %378  ;;  %v2578_v35 = vpop.permute.xlu0 %614 }
  0x93   : > { %658 = vperm.xlu1 %2290, %v2455_v0  }
  0x94   : > { %906 = vperm.xlu0 %2311, %v2484_v9  }
  0x96   : > { %v2583_v37 = vpop.permute.xlu0 %622 }
  0x97   : > { %2292 = vset.pattern.permute.xlu1 %v2385_v11  ;;  %v2564_v30 = vpop.permute.xlu1 %262  ;;  %v631_v3 = vmul.f32 %v2583_v37, %v2551_v25 }
  0x98   : > { %346 = vperm.xlu1 %2292, %v2484_v9   ;;  %2318 = vset.pattern.permute.xlu0 %v2396_v31 }
  0x99   : > { %182 = vperm.xlu0 %2318, %v2471_v6  }
  0x9b   : > { %v695_v41 = vpop.permute.xlu0 %694 }
  0x9c   : > { %2293 = vset.pattern.permute.xlu1 %v2394_v20  ;;  %v2569_v32 = vpop.permute.xlu1 %498  ;;  %v709_v42 = vmul.f32 %v695_v41, %v2551_v25  ;;  %v2409_v41 = vmov 0  }
  0x9d   : > { %582 = vperm.xlu1 %2293, %v2471_v6   ;;  %186 = vperm.xlu0 %2318, %v2484_v9  }
  0x9f   : > { %v699_v44 = vpop.permute.xlu0 %698 }
  0xa0   : > { %v710_v51 = vmul.f32 %v699_v44, %v2551_v25  ;;  %v270_v44 = vmul.f32 %v2544_v22, %v2551_v25 }
  0xa1   : > { %2296 = vset.pattern.permute.xlu1 %v2393_v19  ;;  %v2574_v33 = vpop.permute.xlu1 %382  ;;  %2321 = vset.pattern.permute.xlu0 %v2397_v34 }
  0xa2   : > { %894 = vperm.xlu1 %2296, %v2460_v1   ;;  %934 = vperm.xlu0 %2321, %v2460_v1  }
  0xa3   : > { %v703_v48 = vpop.permute.xlu0 %702 }
  0xa4   : > { %v711_v15 = vmul.f32 %v703_v48, %v2551_v25 }
  0xa6   : > { %2297 = vset.pattern.permute.xlu1 %v2396_v31  ;;  %v619_v36 = vpop.permute.xlu1 %618  ;;  %942 = vperm.xlu0 %2321, %v2471_v6  }
  0xa7   : > { %174 = vperm.xlu1 %2297, %v2460_v1   ;;  %v630_v46 = vmul.f32 %v619_v36, %v2551_v25 }
  0xa8   : > { %v2614_v52 = vpop.permute.xlu0 %774 }
  0xaa   : > { %946 = vperm.xlu0 %2321, %v2484_v9  }
  0xab   : > { %2298 = vset.pattern.permute.xlu1 %v2390_v16  ;;  %v267_v38 = vpop.permute.xlu1 %266 }
  0xac   : > { %662 = vperm.xlu1 %2298, %v2471_v6   ;;  %v272_v49 = vmul.f32 %v267_v38, %v2551_v25  ;;  %v2620_v54 = vpop.permute.xlu0 %782 }
  0xae   : > { %2324 = vset.pattern.permute.xlu0 %v2398_v39 }
  0xaf   : > { %1134 = vperm.xlu0 %2324, %v2460_v1  }
  0xb0   : > { %2299 = vset.pattern.permute.xlu1 %v2387_v13  ;;  %v2590_v40 = vpop.permute.xlu1 %502  ;;  %v2629_v57 = vpop.permute.xlu0 %786 }
  0xb1   : > { %818 = vperm.xlu1 %2299, %v2455_v0  }
  0xb3   : > { %1138 = vperm.xlu0 %2324, %v2455_v0  }
  0xb5   : > { %2300 = vset.pattern.permute.xlu1 %v2394_v20  ;;  %v2596_v43 = vpop.permute.xlu1 %854  ;;  %v2633_v59 = vpop.permute.xlu0 %342 }
  0xb6   : > { %586 = vperm.xlu1 %2300, %v2484_v9  }
  0xb7   : > { %717 = vrot.lane.b32.xlu0 %v709_v42, %s2399_s24 }
  0xb8   : > { %2335 = vset.pattern.permute.xlu0 %v2400_v45 }
  0xba   : > { %2301 = vset.pattern.permute.xlu1 %v2388_v14  ;;  %v2603_v47 = vpop.permute.xlu1 %386  ;;  %v2641_v63 = vpop.permute.xlu0 %214 }
  0xbb   : > { %742 = vperm.xlu1 %2301, %v2471_v6   ;;  %639 = vrot.lane.b32.xlu0 %v630_v46, %s2401_s25 }
  0xbe   : > { %v2654_v7 = vpop.permute.xlu0 %222 }
  0xbf   : > { %2302 = vset.pattern.permute.xlu1 %v2392_v18  ;;  %v2609_v50 = vpop.permute.xlu1 %778  ;;  %283 = vrot.lane.b32.xlu0 %v272_v49, %s2402_s26 }
  0xc0   : > { %974 = vperm.xlu1 %2302, %v2460_v1  }
  0xc2   : > { %v2661_v11 = vpop.permute.xlu0 %226 }
  0xc3   : > { %719 = vrot.lane.b32.xlu0 %v710_v51, %s2399_s24  ;;  %v509_v51 = vmul.f32 %v2553_v26, %v2551_v25 }
  0xc4   : > { %2303 = vset.pattern.permute.xlu1 %v2396_v31  ;;  %v2617_v53 = vpop.permute.xlu1 %506 }
  0xc5   : > { %178 = vperm.xlu1 %2303, %v2455_v0  }
  0xc7   : > { %306 = vperm.xlu0 %2335, %v2484_v9   ;;  %v2669_v16 = vpop.permute.xlu0 %814 }
  0xc9   : > { %2305 = vset.pattern.permute.xlu1 %v2387_v13  ;;  %v2624_v55 = vpop.permute.xlu1 %858 }
  0xca   : > { %822 = vperm.xlu1 %2305, %v2471_v6  }
  0xcb   : > { %2336 = vset.pattern.permute.xlu0 %v2403_v56 }
  0xcc   : > { %1174 = vperm.xlu0 %2336, %v2460_v1   ;;  %v2677_v21 = vpop.permute.xlu0 %738 }
  0xce   : > { %2306 = vset.pattern.permute.xlu1 %v2397_v34  ;;  %v627_v58 = vpop.permute.xlu1 %626 }
  0xcf   : > { %938 = vperm.xlu1 %2306, %v2455_v0   ;;  %v632_v23 = vmul.f32 %v627_v58, %v2551_v25 }
  0xd0   : > { %1178 = vperm.xlu0 %2336, %v2455_v0  }
  0xd1   : > { %v2683_v27 = vpop.permute.xlu0 %454 }
  0xd3   : > { %2308 = vset.pattern.permute.xlu1 %v2388_v14  ;;  %v707_v60 = vpop.permute.xlu1 %706  ;;  %v2406_v14 = vmov 29  }
  0xd4   : > { %746 = vperm.xlu1 %2308, %v2484_v9   ;;  %1182 = vperm.xlu0 %2336, %v2471_v6   ;;  %v712_v31 = vmul.f32 %v707_v60, %v2551_v25 }
  0xd5   : > { %v2692_v36 = vpop.permute.xlu0 %466 }
  0xd8   : > { %2309 = vset.pattern.permute.xlu1 %v2393_v19  ;;  %v2639_v61 = vpop.permute.xlu1 %862  ;;  %2339 = vset.pattern.permute.xlu0 %v2404_v62 }
  0xd9   : > { %902 = vperm.xlu1 %2309, %v2471_v6   ;;  %418 = vperm.xlu0 %2339, %v2455_v0  }
  0xda   : > { %v2699_v38 = vpop.permute.xlu0 %666 }
  0xdc   : > { %v2645_v2 = vpop.permute.xlu1 %866 }
  0xdd   : > { %2312 = vset.pattern.permute.xlu1 %v2405_v4  ;;  %422 = vperm.xlu0 %2339, %v2471_v6  }
  0xde   : > { %1054 = vperm.xlu1 %2312, %v2460_v1  }
  0xdf   : > { %v2708_v46 = vpop.permute.xlu0 %1014 }
  0xe1   : > { %v2656_v8 = vpop.permute.xlu1 %334  ;;  %641 = vrot.lane.b32.xlu0 %v631_v3, %s2401_s25  ;;  %v2411_v3 = vmov 26  }
  0xe2   : > { %277 = vrot.lane.b32.xlu1 %v269_v5, %s2402_s26 }
  0xe3   : > { %2313 = vset.pattern.permute.xlu1 %v2400_v45 }
  0xe4   : > { %v2717_v22 = vpop.permute.xlu0 %978 }
  0xe5   : > { %426 = vperm.xlu0 %2339, %v2484_v9  }
  0xe6   : > { %v219_v12 = vpop.permute.xlu1 %218  ;;  %294 = vperm.xlu1 %2313, %v2460_v1  }
  0xe7   : > { %v230_v48 = vmul.f32 %v219_v12, %v2551_v25  ;;  %v351_v12 = vmul.f32 %v2633_v59, %v2551_v25 }
  0xe9   : > { %2341 = vset.pattern.permute.xlu0 %v2406_v14  ;;  %v899_v26 = vpop.permute.xlu0 %898 }
  0xea   : > { %538 = vperm.xlu0 %2341, %v2455_v0   ;;  %2314 = vset.pattern.permute.xlu1 %v2387_v13  ;;  %v2407_v13 = vmov 13  }
  0xeb   : > { %v2671_v19 = vpop.permute.xlu1 %338  ;;  %826 = vperm.xlu1 %2314, %v2484_v9  }
  0xee   : > { %721 = vrot.lane.b32.xlu0 %v711_v15, %s2399_s24 }
  0xef   : > { %2315 = vset.pattern.permute.xlu1 %v2391_v17 }
  0xf0   : > { %v575_v20 = vpop.permute.xlu1 %574  ;;  %1018 = vperm.xlu1 %2315, %v2455_v0  }
  0xf1   : > { %v589_v60 = vmul.f32 %v575_v20, %v2551_v25 }
  0xf2   : > { %546 = vperm.xlu0 %2341, %v2484_v9  }
  0xf4   : > { %2316 = vset.pattern.permute.xlu1 %v2407_v13 }
  0xf5   : > { %v459_v24 = vpop.permute.xlu1 %458  ;;  %1094 = vperm.xlu1 %2316, %v2460_v1  }
  0xf6   : > { %643 = vrot.lane.b32.xlu0 %v632_v23, %s2401_s25  ;;  %v470_v5 = vmul.f32 %v459_v24, %v2551_v25  ;;  %v390_v24 = vmul.f32 %v2559_v29, %v2551_v25 }
  0xf7   : > { %2345 = vset.pattern.permute.xlu0 %v2408_v28 }
  0xf9   : > { %2317 = vset.pattern.permute.xlu1 %v2404_v62 }
  0xfa   : > { %v2688_v34 = vpop.permute.xlu1 %654  ;;  %723 = vrot.lane.b32.xlu0 %v712_v31, %s2399_s24  ;;  %414 = vperm.xlu1 %2317, %v2460_v1  }
  0xfe   : > { %1258 = vperm.xlu0 %2345, %v2484_v9   ;;  %2319 = vset.pattern.permute.xlu1 %v2392_v18 }
  0xff   : > { %v2696_v37 = vpop.permute.xlu1 %578  ;;  %982 = vperm.xlu1 %2319, %v2471_v6  }
 0x102   : > { %2346 = vset.pattern.permute.xlu0 %v2409_v41  ;;  %v2735_v20 = vpop.permute.xlu0 %397 }
 0x103   : > { %151 = vperm.xlu0 %2346, %v2460_v1   ;;  %2320 = vset.pattern.permute.xlu1 %v2405_v4 }
 0x104   : > { %v735_v42 = vpop.permute.xlu1 %734  ;;  %1058 = vperm.xlu1 %2320, %v2455_v0  }
 0x105   : > { %v749_v23 = vmul.f32 %v735_v42, %v2551_v25  ;;  %v629_v42 = vmul.f32 %v2578_v35, %v2551_v25 }
 0x107   : > { %161 = vperm.xlu0 %2346, %v2471_v6  }
 0x108   : > { %279 = vrot.lane.b32.xlu1 %v270_v44, %s2402_s26 }
 0x109   : > { %v463_v49 = vpop.permute.xlu1 %462  ;;  %2322 = vset.pattern.permute.xlu1 %v2400_v45 }
 0x10a   : > { %v471_v44 = vmul.f32 %v463_v49, %v2551_v25 }
 0x10b   : > { %239 = vrot.lane.b32.xlu0 %v230_v48, %s2402_s26 }
 0x10c   : > { %517 = vrot.lane.b32.xlu1 %v509_v51, %s2410_s27  ;;  %v829_v51 = vmul.f32 %v2669_v16, %v2551_v25 }
 0x10e   : > { %v2719_v58 = vpop.permute.xlu1 %658 }
 0x10f   : > { %166 = vperm.xlu0 %2346, %v2484_v9   ;;  %v2743_v59 = vpop.permute.xlu0 %906 }
 0x110   : > { %298 = vperm.xlu1 %2322, %v2455_v0  }
 0x113   : > { %v2724_v62 = vpop.permute.xlu1 %346  ;;  %597 = vrot.lane.b32.xlu0 %v589_v60, %s2401_s25 }
 0x114   : > { %2323 = vset.pattern.permute.xlu1 %v2406_v14  ;;  %2349 = vset.pattern.permute.xlu0 %v2411_v3  ;;  %v2757_v60 = vpop.permute.xlu0 %182 }
 0x115   : > { %534 = vperm.xlu1 %2323, %v2460_v1  }
 0x117   : > { %479 = vrot.lane.b32.xlu0 %v470_v5, %s2410_s27 }
 0x118   : > { %v583_v15 = vpop.permute.xlu1 %582  ;;  %v2764_v35 = vpop.permute.xlu0 %186 }
 0x119   : > { %2325 = vset.pattern.permute.xlu1 %v2391_v17  ;;  %v591_v29 = vmul.f32 %v583_v15, %v2551_v25  ;;  %v271_v15 = vmul.f32 %v2564_v30, %v2551_v25 }
 0x11a   : > { %1022 = vperm.xlu1 %2325, %v2471_v6  }
 0x11b   : > { %361 = vrot.lane.b32.xlu0 %v351_v12, %s2395_s23 }
 0x11d   : > { %v895_v31 = vpop.permute.xlu1 %894 }
 0x11e   : > { %2326 = vset.pattern.permute.xlu1 %v2407_v13 }
 0x11f   : > { %1098 = vperm.xlu1 %2326, %v2455_v0   ;;  %757 = vrot.lane.b32.xlu0 %v749_v23, %s2412_s28  ;;  %v935_v23 = vpop.permute.xlu0 %934 }
 0x122   : > { %v2748_v48 = vpop.permute.xlu1 %174 }
 0x123   : > { %399 = vrot.lane.b32.xlu1 %v390_v24, %s2395_s23  ;;  %481 = vrot.lane.b32.xlu0 %v471_v44, %s2410_s27  ;;  %v949_v24 = vmul.f32 %v935_v23, %v2551_v25 }
 0x124   : > { %2327 = vset.pattern.permute.xlu1 %v2392_v18  ;;  %v909_v18 = vmul.f32 %v895_v31, %v2551_v25  ;;  %v510_v31 = vmul.f32 %v2569_v32, %v2551_v25  ;;  %v672_v32 = vmul.f32 %v2699_v38, %v2551_v25 }
 0x127   : > { %v663_v5 = vpop.permute.xlu1 %662  ;;  %637 = vrot.lane.b32.xlu1 %v629_v42, %s2401_s25  ;;  %837 = vrot.lane.b32.xlu0 %v829_v51, %s2413_s29  ;;  %v910_v42 = vmul.f32 %v899_v26, %v2551_v25 }
 0x128   : > { %v671_v49 = vmul.f32 %v663_v5, %v2551_v25 }
 0x12b   : > { %986 = vperm.xlu1 %2327, %v2484_v9   ;;  %601 = vrot.lane.b32.xlu0 %v591_v29, %s2401_s25  ;;  %v789_v29 = vmul.f32 %v2614_v52, %v2551_v25  ;;  %v943_v52 = vpop.permute.xlu0 %942 }
 0x12c   : > { %v2766_v16 = vpop.permute.xlu1 %818 }
 0x12f   : > { %2328 = vset.pattern.permute.xlu1 %v2405_v4  ;;  %917 = vrot.lane.b32.xlu0 %v909_v18, %s2414_s30 }
 0x130   : > { %1062 = vperm.xlu1 %2328, %v2471_v6  }
 0x131   : > { %v587_v12 = vpop.permute.xlu1 %586 }
 0x132   : > { %v592_v30 = vmul.f32 %v587_v12, %v2551_v25 }
 0x133   : > { %681 = vrot.lane.b32.xlu0 %v671_v49, %s2399_s24  ;;  %v990_v49 = vmul.f32 %v2717_v22, %v2551_v25  ;;  %v511_v22 = vmul.f32 %v2590_v40, %v2551_v25 }
 0x134   : > { %281 = vrot.lane.b32.xlu1 %v271_v15, %s2402_s26  ;;  %v947_v15 = vpop.permute.xlu0 %946 }
 0x135   : > { %2329 = vset.pattern.permute.xlu1 %v2400_v45 }
 0x136   : > { %v2781_v44 = vpop.permute.xlu1 %742 }
 0x137   : > { %957 = vrot.lane.b32.xlu0 %v949_v24, %s2415_s3  ;;  %v869_v24 = vmul.f32 %v2596_v43, %v2551_v25 }
 0x138   : > { %519 = vrot.lane.b32.xlu1 %v510_v31, %s2410_s27 }
 0x13b   : > { %v2787_v51 = vpop.permute.xlu1 %974  ;;  %603 = vrot.lane.b32.xlu0 %v592_v30, %s2401_s25  ;;  %v951_v30 = vmul.f32 %v943_v52, %v2551_v25 }
 0x13c   : > { %302 = vperm.xlu1 %2329, %v2471_v6  }
 0x13f   : > { %919 = vrot.lane.b32.xlu0 %v910_v42, %s2414_s30  ;;  %v2839_v42 = vpop.permute.xlu0 %1134 }
 0x140   : > { %v2794_v45 = vpop.permute.xlu1 %178  ;;  %2330 = vset.pattern.permute.xlu1 %v2391_v17  ;;  %v391_v17 = vmul.f32 %v2574_v33, %v2551_v25 }
 0x141   : > { %1026 = vperm.xlu1 %2330, %v2484_v9  }
 0x143   : > { %683 = vrot.lane.b32.xlu0 %v672_v32, %s2399_s24  ;;  %v2847_v32 = vpop.permute.xlu0 %1138 }
 0x145   : > { %v2799_v26 = vpop.permute.xlu1 %822  ;;  %2331 = vset.pattern.permute.xlu1 %v2407_v13 }
 0x146   : > { %1102 = vperm.xlu1 %2331, %v2471_v6  }
 0x14a   : > { %v939_v5 = vpop.permute.xlu1 %938  ;;  %2332 = vset.pattern.permute.xlu1 %v2408_v28 }
 0x14b   : > { %v950_v38 = vmul.f32 %v939_v5, %v2551_v25  ;;  %1246 = vperm.xlu1 %2332, %v2460_v1  }
 0x14d   : > { %959 = vrot.lane.b32.xlu0 %v950_v38, %s2415_s3  ;;  %v2853_v38 = vpop.permute.xlu0 %717 }
 0x14f   : > { %v2811_v18 = vpop.permute.xlu1 %746  ;;  %401 = vrot.lane.b32.xlu1 %v391_v17, %s2395_s23  ;;  %v912_v17 = vmul.f32 %v2743_v59, %v2551_v25 }
 0x150   : > { %2333 = vset.pattern.permute.xlu1 %v2405_v4 }
 0x151   : > { %198 = vperm.xlu0 %2349, %v2455_v0   ;;  %v2868_v52 = vpop.permute.xlu0 %639 }
 0x153   : > { %797 = vrot.lane.b32.xlu1 %v789_v29, %s2412_s28 }
 0x154   : > { %v2819_v12 = vpop.permute.xlu1 %902 }
 0x155   : > { %999 = vrot.lane.b32.xlu0 %v990_v49, %s2416_s4  ;;  %v790_v49 = vmul.f32 %v2609_v50, %v2551_v25 }
 0x157   : > { %1066 = vperm.xlu1 %2333, %v2484_v9  }
 0x159   : > { %v2823_v33 = vpop.permute.xlu1 %1054 }
 0x15b   : > { %2334 = vset.pattern.permute.xlu1 %v2398_v39 }
 0x15c   : > { %1142 = vperm.xlu1 %2334, %v2471_v6  }
 0x15d   : > { %v2827_v4 = vpop.permute.xlu1 %277 }
 0x160   : > { %521 = vrot.lane.b32.xlu1 %v511_v22, %s2410_s27  ;;  %v2873_v22 = vpop.permute.xlu0 %283 }
 0x161   : > { %v295_v23 = vpop.permute.xlu1 %294  ;;  %2337 = vset.pattern.permute.xlu1 %v2406_v14 }
 0x162   : > { %v309_v31 = vmul.f32 %v295_v23, %v2551_v25  ;;  %v512_v23 = vmul.f32 %v2617_v53, %v2551_v25 }
 0x164   : > { %877 = vrot.lane.b32.xlu1 %v869_v24, %s2413_s29  ;;  %317 = vrot.lane.b32.xlu0 %v309_v31, %s2402_s26  ;;  %v2879_v24 = vpop.permute.xlu0 %719  ;;  %v870_v31 = vmul.f32 %v2624_v55, %v2551_v25 }
 0x166   : > { %v2841_v40 = vpop.permute.xlu1 %826 }
 0x168   : > { %542 = vperm.xlu1 %2337, %v2471_v6   ;;  %961 = vrot.lane.b32.xlu0 %v951_v30, %s2415_s3  ;;  %v2891_v53 = vpop.permute.xlu0 %306 }
 0x16b   : > { %v2845_v14 = vpop.permute.xlu1 %1018 }
 0x16c   : > { %2338 = vset.pattern.permute.xlu1 %v2407_v13  ;;  %v392_v13 = vmul.f32 %v2603_v47, %v2551_v25 }
 0x16d   : > { %1106 = vperm.xlu1 %2338, %v2484_v9  }
 0x170   : > { %v1095_v43 = vpop.permute.xlu1 %1094 }
 0x171   : > { %v1109_v5 = vmul.f32 %v1095_v43, %v2551_v25  ;;  %2340 = vset.pattern.permute.xlu1 %v2408_v28 }
 0x172   : > { %1250 = vperm.xlu1 %2340, %v2455_v0  }
 0x173   : > { %1117 = vrot.lane.b32.xlu0 %v1109_v5, %s2417_s5 }
 0x175   : > { %v2861_v29 = vpop.permute.xlu1 %414 }
 0x176   : > { %403 = vrot.lane.b32.xlu1 %v392_v13, %s2395_s23  ;;  %v2896_v13 = vpop.permute.xlu0 %1174 }
 0x177   : > { %2342 = vset.pattern.permute.xlu1 %v2398_v39  ;;  %923 = vrot.lane.b32.xlu0 %v912_v17, %s2414_s30  ;;  %v952_v17 = vmul.f32 %v947_v15, %v2551_v25  ;;  %v871_v15 = vmul.f32 %v2639_v61, %v2551_v25 }
 0x17a   : > { %799 = vrot.lane.b32.xlu1 %v790_v49, %s2412_s28  ;;  %v2871_v59 = vpop.permute.xlu1 %982  ;;  %v1179_v49 = vpop.permute.xlu0 %1178 }
 0x17e   : > { %1146 = vperm.xlu1 %2342, %v2484_v9  }
 0x17f   : > { %v1059_v47 = vpop.permute.xlu1 %1058 }
 0x180   : > { %v1070_v39 = vmul.f32 %v1059_v47, %v2551_v25  ;;  %v792_v47 = vmul.f32 %v2629_v57, %v2551_v25 }
 0x182   : > { %523 = vrot.lane.b32.xlu1 %v512_v23, %s2410_s27  ;;  %1079 = vrot.lane.b32.xlu0 %v1070_v39, %s2418_s6  ;;  %v2915_v23 = vpop.permute.xlu0 %1182 }
 0x183   : > { %v2883_v50 = vpop.permute.xlu1 %279  ;;  %2343 = vset.pattern.permute.xlu1 %v2403_v56  ;;  %v791_v56 = vmul.f32 %v2620_v54, %v2551_v25 }
 0x186   : > { %879 = vrot.lane.b32.xlu1 %v870_v31, %s2413_s29  ;;  %v419_v31 = vpop.permute.xlu0 %418 }
 0x187   : > { %v2889_v30 = vpop.permute.xlu1 %517 }
 0x18a   : > { %1186 = vperm.xlu1 %2343, %v2484_v9  }
 0x18b   : > { %v299_v43 = vpop.permute.xlu1 %298 }
 0x18c   : > { %v310_v5 = vmul.f32 %v299_v43, %v2551_v25  ;;  %v430_v43 = vmul.f32 %v419_v31, %v2551_v25  ;;  %v590_v31 = vmul.f32 %v2696_v37, %v2551_v25  ;;  %v670_v37 = vmul.f32 %v2719_v58, %v2551_v25 }
 0x18d   : > { %v750_v58 = vmul.f32 %v2677_v21, %v2551_v25 }
 0x18e   : > { %2344 = vset.pattern.permute.xlu1 %v2408_v28  ;;  %319 = vrot.lane.b32.xlu0 %v310_v5, %s2402_s26  ;;  %v229_v5 = vmul.f32 %v2641_v63, %v2551_v25  ;;  %v469_v63 = vmul.f32 %v2683_v27, %v2551_v25 }
 0x18f   : > { %1254 = vperm.xlu1 %2344, %v2471_v6  }
 0x190   : > { %v2901_v55 = vpop.permute.xlu1 %534 }
 0x192   : > { %963 = vrot.lane.b32.xlu0 %v952_v17, %s2415_s3  ;;  %v3451_v17 = vmov 30  }
 0x193   : > { %801 = vrot.lane.b32.xlu1 %v791_v56, %s2412_s28 }
 0x194   : > { %2347 = vset.pattern.permute.xlu1 %v2409_v41  ;;  %v872_v41 = vmul.f32 %v2645_v2, %v2551_v25 }
 0x195   : > { %v2910_v28 = vpop.permute.xlu1 %1022 }
 0x197   : > { %881 = vrot.lane.b32.xlu1 %v871_v15, %s2413_s29 }
 0x19a   : > { %v1099_v54 = vpop.permute.xlu1 %1098 }
 0x19b   : > { %v1110_v39 = vmul.f32 %v1099_v54, %v2551_v25  ;;  %803 = vrot.lane.b32.xlu1 %v792_v47, %s2412_s28 }
 0x19d   : > { %1119 = vrot.lane.b32.xlu0 %v1110_v39, %s2417_s5  ;;  %v669_v39 = vmul.f32 %v2688_v34, %v2551_v25  ;;  %v232_v34 = vmul.f32 %v2661_v11, %v2551_v25  ;;  %v352_v11 = vmul.f32 %v2724_v62, %v2551_v25 }
 0x19e   : > { %v2922_v61 = vpop.permute.xlu1 %399 }
 0x19f   : > { %883 = vrot.lane.b32.xlu1 %v872_v41, %s2413_s29  ;;  %v2960_v41 = vpop.permute.xlu0 %422 }
 0x1a1   : > { %206 = vperm.xlu0 %2349, %v2484_v9   ;;  %v349_v9 = vmul.f32 %v2656_v8, %v2551_v25  ;;  %v231_v8 = vmul.f32 %v2654_v7, %v2551_v25 }
 0x1a2   : > { %v2927_v57 = vpop.permute.xlu1 %637 }
 0x1a3   : > { %156 = vperm.xlu1 %2347, %v2455_v0  }
 0x1a5   : > { %439 = vrot.lane.b32.xlu0 %v430_v43, %s2395_s23  ;;  %v1190_v43 = vmul.f32 %v1179_v49, %v2551_v25 }
 0x1a6   : > { %v2933_v2 = vpop.permute.xlu1 %986  ;;  %2354 = vset.pattern.permute.xlu0 %v3451_v17 }
 0x1a7   : > { %237 = vrot.lane.b32.xlu1 %v229_v5, %s2402_s26  ;;  %v2971_v5 = vpop.permute.xlu0 %641 }
 0x1a8   : > { %2348 = vset.pattern.permute.xlu1 %v2411_v3  ;;  %v350_v3 = vmul.f32 %v2671_v19, %v2551_v25 }
 0x1ab   : > { %v1063_v56 = vpop.permute.xlu1 %1062  ;;  %357 = vrot.lane.b32.xlu1 %v349_v9, %s2395_s23 }
 0x1ac   : > { %v1071_v0 = vmul.f32 %v1063_v56, %v2551_v25  ;;  %v2981_v56 = vpop.permute.xlu0 %426 }
 0x1ae   : > { %1081 = vrot.lane.b32.xlu0 %v1071_v0, %s2418_s6 }
 0x1af   : > { %v2945_v15 = vpop.permute.xlu1 %281  ;;  %477 = vrot.lane.b32.xlu1 %v469_v63, %s2410_s27  ;;  %v2422_v63 = vmov 16  }
 0x1b3   : > { %v2950_v47 = vpop.permute.xlu1 %519  ;;  %359 = vrot.lane.b32.xlu1 %v350_v3, %s2395_s23  ;;  %v2994_v3 = vpop.permute.xlu0 %538 }
 0x1b7   : > { %v303_v54 = vpop.permute.xlu1 %302  ;;  %241 = vrot.lane.b32.xlu1 %v231_v8, %s2402_s26 }
 0x1b8   : > { %v311_v27 = vmul.f32 %v303_v54, %v2551_v25  ;;  %v3003_v54 = vpop.permute.xlu0 %721 }
 0x1ba   : > { %321 = vrot.lane.b32.xlu0 %v311_v27, %s2402_s26 }
 0x1bb   : > { %677 = vrot.lane.b32.xlu1 %v669_v39, %s2399_s24 }
 0x1bc   : > { %v1027_v19 = vpop.permute.xlu1 %1026  ;;  %v3010_v39 = vpop.permute.xlu0 %546 }
 0x1bd   : > { %v1032_v7 = vmul.f32 %v1027_v19, %v2551_v25  ;;  %3453 = vst [vmem:[#allocation2_spill] sm:$0xff] %v3010_v39  ;;  %v312_v19 = vmul.f32 %v2891_v53, %v2551_v25  ;;  %v989_v53 = vmul.f32 %v2787_v51, %v2551_v25  ;;  %v752_v51 = vmul.f32 %v2811_v18, %v2551_v25 }
 0x1be   : > { %v1069_v18 = vmul.f32 %v2823_v33, %v2551_v25 }
 0x1bf   : > { %1043 = vrot.lane.b32.xlu0 %v1032_v7, %s2420_s7  ;;  %599 = vrot.lane.b32.xlu1 %v590_v31, %s2401_s25  ;;  %v2366_v31 = vld [vmem:[%s3447_s1] sm:$0xff] }
 0x1c0   : > { %v644_v7 = vpop.permute.xlu0 %643 }
 0x1c1   : > { %v2973_v9 = vpop.permute.xlu1 %1102 }
 0x1c3   : > { %243 = vrot.lane.b32.xlu1 %v232_v34, %s2402_s26  ;;  %1199 = vrot.lane.b32.xlu0 %v1190_v43, %s2421_s8 }
 0x1c6   : > { %v2979_v49 = vpop.permute.xlu1 %1246 }
 0x1c7   : > { %679 = vrot.lane.b32.xlu1 %v670_v37, %s2399_s24  ;;  %1286 = vperm.xlu0 %2354, %v2471_v6   ;;  %v472_v6 = vmul.f32 %v2692_v36, %v2551_v25  ;;  %v831_v37 = vmul.f32 %v2799_v26, %v2551_v25  ;;  %v3048_v26 = vld [vmem:[%s3447_s1 + $0x18] sm:$0xff] }
 0x1ca   : > { %v2987_v0 = vpop.permute.xlu1 %401 }
 0x1cb   : > { %363 = vrot.lane.b32.xlu1 %v352_v11, %s2395_s23  ;;  %2355 = vset.pattern.permute.xlu0 %v2422_v63  ;;  %v724_v11 = vpop.permute.xlu0 %723 }
 0x1cc   : > { %1214 = vperm.xlu0 %2355, %v2460_v1   ;;  %v830_v1 = vmul.f32 %v2766_v16, %v2551_v25  ;;  %v751_v16 = vmul.f32 %v2781_v44, %v2551_v25 }
 0x1ce   : > { %v2996_v8 = vpop.permute.xlu1 %797 }
 0x1cf   : > { %759 = vrot.lane.b32.xlu1 %v750_v58, %s2412_s28  ;;  %v1029_v58 = vmul.f32 %v2708_v46, %v2551_v25  ;;  %v911_v46 = vmul.f32 %v2819_v12, %v2551_v25 }
 0x1d2   : > { %v3001_v62 = vpop.permute.xlu1 %1066 }
 0x1d3   : > { %483 = vrot.lane.b32.xlu1 %v472_v6, %s2410_s27 }
 0x1d7   : > { %v1143_v27 = vpop.permute.xlu1 %1142  ;;  %839 = vrot.lane.b32.xlu1 %v830_v1, %s2413_s29  ;;  %v3037_v1 = vpop.permute.xlu0 %1258 }
 0x1d8   : > { %v1151_v21 = vmul.f32 %v1143_v27, %v2551_v25 }
 0x1da   : > { %1161 = vrot.lane.b32.xlu0 %v1151_v21, %s2423_s11 }
 0x1db   : > { %v3015_v36 = vpop.permute.xlu1 %521  ;;  %194 = vperm.xlu1 %2348, %v2366_v31   ;;  %v3054_v21 = vpop.permute.xlu0 %151 }
 0x1de   : > { %323 = vrot.lane.b32.xlu0 %v312_v19, %s2402_s26 }
 0x1df   : > { %v3023_v43 = vpop.permute.xlu1 %877  ;;  %761 = vrot.lane.b32.xlu1 %v751_v16, %s2412_s28 }
 0x1e3   : > { %v3028_v34 = vpop.permute.xlu1 %542  ;;  %997 = vrot.lane.b32.xlu1 %v989_v53, %s2416_s4  ;;  %v3061_v53 = vpop.permute.xlu0 %161 }
 0x1e7   : > { %841 = vrot.lane.b32.xlu1 %v831_v37, %s2413_s29  ;;  %v832_v37 = vmul.f32 %v2841_v40, %v2551_v25  ;;  %v3071_v33 = vpop.permute.xlu0 %239  ;;  %v3081_v40 = vld [vmem:[%s3447_s1 + $0x10] sm:$0xff] }
 0x1e8   : > { %v1107_v44 = vpop.permute.xlu1 %1106 }
 0x1e9   : > { %v1112_v6 = vmul.f32 %v1107_v44, %v2551_v25 }
 0x1eb   : > { %1123 = vrot.lane.b32.xlu0 %v1112_v6, %s2417_s5  ;;  %1037 = vrot.lane.b32.xlu1 %v1029_v58, %s2420_s7  ;;  %v1030_v58 = vmul.f32 %v2845_v14, %v2551_v25  ;;  %v192_v14 = vmul.f32 %v2764_v35, %v2551_v25  ;;  %v991_v35 = vmul.f32 %v2871_v59, %v2551_v25 }
 0x1ec   : > { %v549_v59 = vmul.f32 %v2901_v55, %v2551_v25  ;;  %v1031_v55 = vmul.f32 %v2910_v28, %v2551_v25  ;;  %v1189_v28 = vmul.f32 %v2896_v13, %v2551_v25  ;;  %v1340_v13 = vld [vmem:[%s3447_s1 + $0x70] sm:$0xff] }
 0x1ed   : > { %v3043_v27 = vpop.permute.xlu1 %1250  ;;  %v292_v10 = vadd.f32 %v2873_v22, %v192_v14 }
 0x1ef   : > { %1226 = vperm.xlu0 %2355, %v3048_v26   ;;  %763 = vrot.lane.b32.xlu1 %v752_v51, %s2412_s28 }
 0x1f1   : > { %v404_v19 = vpop.permute.xlu1 %403 }
 0x1f3   : > { %921 = vrot.lane.b32.xlu1 %v911_v46, %s2414_s30  ;;  %v3076_v46 = vpop.permute.xlu0 %166 }
 0x1f5   : > { %v3059_v16 = vpop.permute.xlu1 %799 }
 0x1f7   : > { %1077 = vrot.lane.b32.xlu1 %v1069_v18, %s2418_s6 }
 0x1f9   : > { %v1147_v44 = vpop.permute.xlu1 %1146 }
 0x1fa   : > { %v1152_v12 = vmul.f32 %v1147_v44, %v2551_v25  ;;  %v3089_v44 = vpop.permute.xlu0 %597 }
 0x1fb   : > { %843 = vrot.lane.b32.xlu1 %v832_v37, %s2413_s29 }
 0x1fc   : > { %1163 = vrot.lane.b32.xlu0 %v1152_v12, %s2423_s11  ;;  %v429_v12 = vmul.f32 %v2861_v29, %v2551_v25  ;;  %v1149_v29 = vmul.f32 %v2839_v42, %v2551_v25  ;;  %v1345_v42 = vld [vmem:[%s3447_s1 + $0x98] sm:$0xff] }
 0x1fd   : > { %v524_v6 = vpop.permute.xlu1 %523 }
 0x1ff   : > { %1039 = vrot.lane.b32.xlu1 %v1030_v58, %s2420_s7 }
 0x201   : > { %v3074_v51 = vpop.permute.xlu1 %879 }
 0x203   : > { %202 = vperm.xlu1 %2348, %v3081_v40  }
 0x205   : > { %v1187_v18 = vpop.permute.xlu1 %1186 }
 0x206   : > { %v1192_v37 = vmul.f32 %v1187_v18, %v2551_v25  ;;  %v412_v18 = vadd.f32 %v404_v19, %v292_v10 }
 0x207   : > { %2350 = vset.pattern.permute.xlu1 %v3451_v17 }
 0x208   : > { %1203 = vrot.lane.b32.xlu0 %v1192_v37, %s2421_s8  ;;  %1278 = vperm.xlu1 %2350, %v2366_v31   ;;  %v3102_v31 = vpop.permute.xlu0 %479  ;;  %v532_v37 = vadd.f32 %v524_v6, %v412_v18  ;;  %v2424_v6 = vmov 0.0  }
 0x209   : > { %1366 = vmatprep.subr.mxu0 %v2424_v6  ;;  %2131 = vmatprep.subr.mxu1 %v2424_v6 }
 0x20a   : > { %v3093_v58 = vpop.permute.xlu1 %1254  ;;  %v652_v22 = vadd.f32 %v644_v7, %v532_v37  ;;  %v1344_v7 = vld [vmem:[%s3447_s1 + $0x90] sm:$0xff]  ;;  %1367 = vmatpush1.msra.mxu0 %v1345_v42  ;;  %v1343_v37 = vld [vmem:[%s3447_s1 + $0x88] sm:$0xff]  ;;  %2139 = vmatprep.mubr.msk.f32.mxu1 %vm2426_vm14, %v2424_v6 }
 0x20b   : > { %1368 = vmatprep.subr.mxu0 %v2424_v6 }
 0x20c   : > { %437 = vrot.lane.b32.xlu1 %v429_v12, %s2395_s23  ;;  %v3110_v10 = vpop.permute.xlu0 %361  ;;  %v732_v14 = vadd.f32 %v724_v11, %v652_v22  ;;  %1369 = vmatpush1.msra.mxu0 %v1344_v7 }
 0x20d   : > { %2351 = vset.pattern.permute.xlu1 %v2422_v63  ;;  %1370 = vmatprep.subr.mxu0 %v2424_v6 }
 0x20e   : > { %v3100_v17 = vpop.permute.xlu1 %801  ;;  %1371 = vmatpush1.msra.mxu0 %v1343_v37 }
 0x20f   : > { %1372 = vmatprep.subr.mxu0 %v2424_v6 }
 0x210   : > { %1001 = vrot.lane.b32.xlu1 %v991_v35, %s2416_s4  ;;  %v3126_v18 = vpop.permute.xlu0 %757 }
 0x212   : > { %v3107_v39 = vpop.permute.xlu1 %881 }
 0x214   : > { %1157 = vrot.lane.b32.xlu1 %v1149_v29, %s2423_s11 }
 0x216   : > { %v804_v19 = vpop.permute.xlu1 %803 }
 0x217   : > { %v812_v12 = vadd.f32 %v804_v19, %v732_v14  ;;  %v3148_v14 = vpop.permute.xlu0 %481 }
 0x218   : > { %557 = vrot.lane.b32.xlu1 %v549_v59, %s2410_s27  ;;  %v1342_v59 = vld [vmem:[%s3447_s1 + $0x80] sm:$0xff] }
 0x219   : > { %1373 = vmatpush1.msra.mxu0 %v1342_v59 }
 0x21a   : > { %v884_v11 = vpop.permute.xlu1 %883  ;;  %1374 = vmatprep.subr.mxu0 %v2424_v6 }
 0x21b   : > { %v892_v35 = vadd.f32 %v884_v11, %v812_v12  ;;  %v2369_v12 = vld [vmem:[%s3447_s1 + $0x8] sm:$0xff]  ;;  %v1338_v11 = vld [vmem:[%s3447_s1 + $0x60] sm:$0xff] }
 0x21c   : > { %1041 = vrot.lane.b32.xlu1 %v1031_v55, %s2420_s7  ;;  %v1339_v55 = vld [vmem:[%s3447_s1 + $0x68] sm:$0xff] }
 0x21d   : > { %v1264_v29 = vadd.f32 %v3037_v1, %v892_v35  ;;  %v1341_v1 = vld [vmem:[%s3447_s1 + $0x78] sm:$0xff]  ;;  %v190_v35 = vmul.f32 %v2794_v45, %v2551_v25  ;;  %v169_v45 = vmul.f32 %v3054_v21, %v2551_v25  ;;  %v1335_v21 = vld [vmem:[%s3447_s1 + $0x48] sm:$0xff] }
 0x21e   : > { %v157_v22 = vpop.permute.xlu1 %156  ;;  %1375 = vmatpush1.msra.mxu0 %v1341_v1  ;;  %v1337_v1 = vld [vmem:[%s3447_s1 + $0x58] sm:$0xff] }
 0x21f   : > { %vm1268_vm1 = vcmp.gt.f32.partialorder %v1264_v29, 0.0  ;;  %v1272_v19 = vmul.f32 0.01, %v1264_v29  ;;  %1376 = vmatprep.subr.mxu0 %v2424_v6  ;;  %v290_v59 = vadd.f32 %v2883_v50, %v190_v35 }
 0x220   : > { %1197 = vrot.lane.b32.xlu1 %v1189_v28, %s2421_s8  ;;  %1377 = vmatpush1.msra.mxu0 %v1340_v13  ;;  %v189_v28 = vmul.f32 %v2748_v48, %v2551_v25  ;;  %v1336_v13 = vld [vmem:[%s3447_s1 + $0x50] sm:$0xff] }
 0x221   : > { %v1276_v42 = vsel %vm1268_vm1, %v1264_v29, %v1272_v19  ;;  %1378 = vmatprep.subr.mxu0 %v2424_v6  ;;  %v3165_v29 = vpop.permute.xlu0 %837  ;;  %v3454_v19 = vmov 30   ;;  %v410_v50 = vadd.f32 %v2922_v61, %v290_v59  ;;  %vm1568_vm1 = vcmask 162816  }
 0x222   : > { %1319 = vrot.lane.b32.xlu0 %v1276_v42, %s2425_s12  ;;  %v238_v7 = vpop.permute.xlu1 %237  ;;  %1379 = vmatpush1.msra.mxu0 %v1339_v55  ;;  %v289_v48 = vadd.f32 %v2827_v4, %v189_v28  ;;  %v992_v55 = vmul.f32 %v2933_v2, %v2551_v25  ;;  %v1334_v2 = vld [vmem:[%s3447_s1 + $0x40] sm:$0xff]  ;;  %v170_v28 = vmul.f32 %v157_v22, %v2551_v25 }
 0x223   : > { %1380 = vmatprep.subr.mxu0 %v2424_v6  ;;  %v249_v4 = vadd.f32 %v238_v7, %v169_v45  ;;  %v171_v7 = vmul.f32 %v3061_v53, %v2551_v25 }
 0x224   : > { %1218 = vperm.xlu1 %2351, %v2369_v12   ;;  %1381 = vmatpush1.msra.mxu0 %v1338_v11  ;;  %v530_v11 = vadd.f32 %v2950_v47, %v410_v50  ;;  %v409_v61 = vadd.f32 %v2735_v20, %v289_v48  ;;  %v1150_v47 = vmul.f32 %v2847_v32, %v2551_v25 }
 0x225   : > { %1382 = vmatprep.subr.mxu0 %v2424_v6 }
 0x226   : > { %v358_v37 = vpop.permute.xlu1 %357  ;;  %1383 = vmatpush1.msra.mxu0 %v1337_v1  ;;  %v529_v20 = vadd.f32 %v2889_v30, %v409_v61  ;;  %v1333_v1 = vld [vmem:[%s3447_s1 + $0x38] sm:$0xff]  ;;  %v1332_v30 = vld [vmem:[%s3447_s1 + $0x30] sm:$0xff] }
 0x227   : > { %1384 = vmatprep.subr.mxu0 %v2424_v6  ;;  %v369_v59 = vadd.f32 %v358_v37, %v249_v4  ;;  %v250_v37 = vadd.f32 %v3071_v33, %v170_v28  ;;  %v1330_v33 = vld [vmem:[%s3447_s1 + $0x20] sm:$0xff] }
 0x228   : > { %2352 = vset.pattern.permute.xlu1 %v3454_v19  ;;  %1385 = vmatpush1.msra.mxu0 %v1336_v13  ;;  %v649_v32 = vadd.f32 %v2927_v57, %v529_v20  ;;  %v1331_v57 = vld [vmem:[%s3447_s1 + $0x28] sm:$0xff] }
 0x229   : > { %1282 = vperm.xlu1 %2352, %v2369_v12   ;;  %1386 = vmatprep.subr.mxu0 %v2424_v6  ;;  %v3190_v12 = vpop.permute.xlu0 %601 }
 0x22a   : > { %v478_v42 = vpop.permute.xlu1 %477  ;;  %1387 = vmatpush1.msra.mxu0 %v1335_v21 }
 0x22b   : > { %1388 = vmatprep.subr.mxu0 %v2424_v6  ;;  %v489_v45 = vadd.f32 %v478_v42, %v369_v59  ;;  %v729_v42 = vadd.f32 %v2853_v38, %v649_v32  ;;  %v1353_v38 = vld [vmem:[%s3447_s1 + $0xd8] sm:$0xff] }
 0x22c   : > { %1389 = vmatpush1.msra.mxu0 %v1334_v2 }
 0x22d   : > { %1003 = vrot.lane.b32.xlu1 %v992_v55, %s2416_s4  ;;  %1390 = vmatprep.subr.mxu0 %v2424_v6  ;;  %v3218_v22 = vpop.permute.xlu0 %917 }
 0x22e   : > { %v360_v35 = vpop.permute.xlu1 %359  ;;  %2353 = vset.pattern.permute.xlu1 %v2422_v63  ;;  %v650_v63 = vadd.f32 %v2868_v52, %v530_v11  ;;  %1391 = vmatpush1.msra.mxu0 %v1333_v1  ;;  %v550_v52 = vmul.f32 %v2994_v3, %v2551_v25  ;;  %v609_v3 = vadd.f32 %v3089_v44, %v489_v45 }
 0x22f   : > { %1392 = vmatprep.subr.mxu0 %v2424_v6  ;;  %v370_v50 = vadd.f32 %v360_v35, %v250_v37  ;;  %v1111_v11 = vmul.f32 %v2973_v9, %v2551_v25  ;;  %v809_v44 = vadd.f32 %v2996_v8, %v729_v42  ;;  %v1072_v1 = vmul.f32 %v3001_v62, %v2551_v25 }
 0x230   : > { %1393 = vmatpush1.msra.mxu0 %v1332_v30  ;;  %v730_v48 = vadd.f32 %v2879_v24, %v650_v63 }
 0x231   : > { %1159 = vrot.lane.b32.xlu1 %v1150_v47, %s2423_s11  ;;  %1394 = vmatprep.subr.mxu0 %v2424_v6  ;;  %v3249_v61 = vpop.permute.xlu0 %681  ;;  %v490_v9 = vadd.f32 %v3102_v31, %v370_v50  ;;  %v889_v8 = vadd.f32 %v3023_v43, %v809_v44  ;;  %v1351_v47 = vld [vmem:[%s3447_s1 + $0xc8] sm:$0xff]  ;;  %v1350_v43 = vld [vmem:[%s3447_s1 + $0xc0] sm:$0xff]  ;;  %v1191_v44 = vmul.f32 %v2915_v23, %v2551_v25 }
 0x232   : > { %v242_v53 = vpop.permute.xlu1 %241  ;;  %1395 = vmatpush1.msra.mxu0 %v1331_v57  ;;  %v810_v24 = vadd.f32 %v3059_v16, %v730_v48  ;;  %v1352_v16 = vld [vmem:[%s3447_s1 + $0xd0] sm:$0xff] }
 0x233   : > { %v3221_v13 = vadd.f32 %v242_v53, %v171_v7  ;;  %1396 = vmatprep.subr.mxu0 %v2424_v6  ;;  %v172_v7 = vmul.f32 %v3076_v46, %v2551_v25  ;;  %v1261_v31 = vadd.f32 %v2979_v49, %v889_v8  ;;  %v191_v46 = vmul.f32 %v2757_v60, %v2551_v25  ;;  %v1349_v49 = vld [vmem:[%s3447_s1 + $0xb8] sm:$0xff]  ;;  %v1348_v60 = vld [vmem:[%s3447_s1 + $0xb0] sm:$0xff] }
 0x234   : > { %1397 = vmatpush1.msra.mxu0 %v1330_v33  ;;  %v890_v4 = vadd.f32 %v3074_v51, %v810_v24 }
 0x235   : > { %559 = vrot.lane.b32.xlu1 %v550_v52, %s2410_s27  ;;  %1414 = vmatprep.subr.mxu0 %v2424_v6  ;;  %v3270_v59 = vpop.permute.xlu0 %957  ;;  %v1269_v63 = vmul.f32 0.01, %v1261_v31  ;;  %vm1265_vm3 = vcmp.gt.f32.partialorder %v1261_v31, 0.0  ;;  %v291_v32 = vadd.f32 %v2945_v15, %v191_v46  ;;  %v1346_v15 = vld [vmem:[%s3447_s1 + $0xa0] sm:$0xff] }
 0x236   : > { %v678_v55 = vpop.permute.xlu1 %677  ;;  %1415 = vmatpush2.msra.mxu0 %v1353_v38  ;;  %v1262_v2 = vadd.f32 %v3043_v27, %v890_v4  ;;  %v431_v27 = vmul.f32 %v2960_v41, %v2551_v25 }
 0x237   : > { %v3238_v21 = vadd.f32 %v678_v55, %v609_v3  ;;  %1416 = vmatprep.subr.mxu0 %v2424_v6  ;;  %v411_v52 = vadd.f32 %v2987_v0, %v291_v32  ;;  %v1273_v37 = vsel %vm1265_vm3, %v1261_v31, %v1269_v63  ;;  %v551_v0 = vmul.f32 %v3028_v34, %v2551_v25 }
 0x238   : > { %1417 = vmatpush2.msra.mxu0 %v1352_v16  ;;  %vm1266_vm2 = vcmp.gt.f32.partialorder %v1262_v2, 0.0  ;;  %v371_v55 = vadd.f32 %v3110_v10, %v3221_v13 }
 0x239   : > { %1121 = vrot.lane.b32.xlu1 %v1111_v11, %s2417_s5  ;;  %1418 = vmatprep.subr.mxu0 %v2424_v6  ;;  %v604_v30 = vpop.permute.xlu0 %603  ;;  %v531_v50 = vadd.f32 %v3015_v36, %v411_v52  ;;  %v769_v34 = vadd.f32 %v3126_v18, %v3238_v21 }
 0x23a   : > { %v600_v51 = vpop.permute.xlu1 %599  ;;  %1419 = vmatpush2.msra.mxu0 %v1351_v47  ;;  %v491_v16 = vadd.f32 %v3148_v14, %v371_v55  ;;  %v432_v14 = vmul.f32 %v2981_v56, %v2551_v25 }
 0x23b   : > { %v610_v35 = vadd.f32 %v600_v51, %v490_v9  ;;  %1420 = vmatprep.subr.mxu0 %v2424_v6  ;;  %v651_v24 = vadd.f32 %v2971_v5, %v531_v50  ;;  %v849_v8 = vadd.f32 %v3165_v29, %v769_v34  ;;  %v3455_v29 = vld [vmem:[#allocation2_spill] sm:$0xff] }
 0x23c   : > { %1421 = vmatpush2.msra.mxu0 %v1350_v43  ;;  %v611_v23 = vadd.f32 %v3190_v12, %v491_v16 }
 0x23d   : > { %1222 = vperm.xlu1 %2353, %v3081_v40   ;;  %v1270_v40 = vmul.f32 0.01, %v1262_v2  ;;  %1422 = vmatprep.subr.mxu0 %v2424_v6  ;;  %v920_v33 = vpop.permute.xlu0 %919  ;;  %v731_v4 = vadd.f32 %v3003_v54, %v651_v24  ;;  %v929_v21 = vadd.f32 %v3218_v22, %v849_v8 }
 0x23e   : > { %v244_v28 = vpop.permute.xlu1 %243  ;;  %1423 = vmatpush2.msra.mxu0 %v1349_v49 }
 0x23f   : > { %v252_v20 = vadd.f32 %v244_v28, %v172_v7  ;;  %1424 = vmatprep.subr.mxu0 %v2424_v6  ;;  %v1274_v53 = vsel %vm1266_vm2, %v1262_v2, %v1270_v40  ;;  %v811_v5 = vadd.f32 %v3100_v17, %v731_v4  ;;  %v691_v17 = vadd.f32 %v3249_v61, %v611_v23 }
 0x240   : > { %1425 = vmatpush2.msra.mxu0 %v1348_v60  ;;  %v2356_v57 = vpack.i.bf16 %v1274_v53, %v1273_v37  ;;  %v969_v56 = vadd.f32 %v3270_v59, %v929_v21 }
 0x241   : > { %441 = vrot.lane.b32.xlu1 %v431_v27, %s2395_s23  ;;  %1426 = vmatprep.subr.mxu0 %v2424_v6  ;;  %v684_v38 = vpop.permute.xlu0 %683  ;;  %v891_v9 = vadd.f32 %v3107_v39, %v811_v5 }
 0x242   : > { %v680_v41 = vpop.permute.xlu1 %679  ;;  %2361 = vset.pattern.permute.xlu1 %v3454_v19  ;;  %v1347_v19 = vld [vmem:[%s3447_s1 + $0xa8] sm:$0xff] }
 0x243   : > { %v690_v45 = vadd.f32 %v680_v41, %v610_v35  ;;  %1427 = vmatpush2.msra.mxu0 %v1347_v19  ;;  %v1263_v18 = vadd.f32 %v3093_v58, %v891_v9  ;;  %v552_v35 = vmul.f32 %v3455_v29, %v2551_v25 }
 0x244   : > { %1428 = vmatprep.subr.mxu0 %v2424_v6 }
 0x245   : > { %1083 = vrot.lane.b32.xlu1 %v1072_v1, %s2418_s6  ;;  %1429 = vmatpush2.msra.mxu0 %v1346_v15  ;;  %v960_v51 = vpop.permute.xlu0 %959  ;;  %v1271_v2 = vmul.f32 0.01, %v1263_v18  ;;  %vm1267_vm4 = vcmp.gt.f32.partialorder %v1263_v18, 0.0 }
 0x246   : > { %v364_v62 = vpop.permute.xlu1 %363 }
 0x247   : > { %v372_v48 = vadd.f32 %v364_v62, %v252_v20  ;;  %v1275_v7 = vsel %vm1267_vm4, %v1263_v18, %v1271_v2  ;;  %vm1667_vm4 = vcmask 195584  }
 0x249   : > { %2357 = vrot.lane.b32.xlu1 %v2356_v57, %s2425_s12 }
 0x24a   : > { %v760_v3 = vpop.permute.xlu1 %759 }
 0x24b   : > { %v770_v42 = vadd.f32 %v760_v3, %v690_v45 }
 0x24d   : > { %561 = vrot.lane.b32.xlu1 %v551_v0, %s2410_s27 }
 0x24e   : > { %v484_v11 = vpop.permute.xlu1 %483 }
 0x24f   : > { %v492_v36 = vadd.f32 %v484_v11, %v372_v48 }
 0x251   : > { %1201 = vrot.lane.b32.xlu1 %v1191_v44, %s2421_s8  ;;  %v612_v31 = vadd.f32 %v604_v30, %v492_v36  ;;  %s2079_s8 = sshll.u32 %s3458_s10, 1 }
 0x252   : > { %v840_v10 = vpop.permute.xlu1 %839  ;;  %s138_s13 = scalar_lea.vmem %s3448_s2, %s2079_s8 }
 0x253   : > { %v850_v13 = vadd.f32 %v840_v10, %v770_v42  ;;  %v692_v46 = vadd.f32 %v684_v38, %v612_v31 }
 0x255   : > { %1290 = vperm.xlu1 %2361, %v3048_v26   ;;  %v3325_v26 = vpop.permute.xlu0 %198  ;;  %v930_v1 = vadd.f32 %v920_v33, %v850_v13 }
 0x256   : > { %v195_v54 = vpop.permute.xlu1 %194 }
 0x257   : > { %v970_v52 = vadd.f32 %v960_v51, %v930_v1  ;;  %v209_v33 = vmul.f32 %v195_v54, %v2551_v25 }
 0x259   : > { %443 = vrot.lane.b32.xlu1 %v432_v14, %s2395_s23  ;;  %v1000_v43 = vpop.permute.xlu0 %999 }
 0x25a   : > { %v762_v39 = vpop.permute.xlu1 %761  ;;  %v1010_v15 = vadd.f32 %v1000_v43, %v970_v52 }
 0x25b   : > { %v771_v12 = vadd.f32 %v762_v39, %v691_v17 }
 0x25d   : > { %563 = vrot.lane.b32.xlu1 %v552_v35, %s2410_s27  ;;  %v318_v27 = vpop.permute.xlu0 %317 }
 0x25e   : > { %v998_v58 = vpop.permute.xlu1 %997  ;;  %v329_v38 = vadd.f32 %v318_v27, %v209_v33 }
 0x25f   : > { %v1009_v47 = vadd.f32 %v998_v58, %v969_v56  ;;  %v210_v58 = vmul.f32 %v3325_v26, %v2551_v25 }
 0x261   : > { %1317 = vrot.lane.b32.xlu1 %v1275_v7, %s2425_s12  ;;  %v962_v49 = vpop.permute.xlu0 %961 }
 0x262   : > { %v842_v22 = vpop.permute.xlu1 %841 }
 0x263   : > { %v851_v61 = vadd.f32 %v842_v22, %v771_v12 }
 0x265   : > { %v1118_v59 = vpop.permute.xlu0 %1117 }
 0x266   : > { %v1038_v28 = vpop.permute.xlu1 %1037 }
 0x267   : > { %v1049_v20 = vadd.f32 %v1038_v28, %v1009_v47 }
 0x269   : > { %v924_v19 = vpop.permute.xlu0 %923 }
 0x26a   : > { %v764_v40 = vpop.permute.xlu1 %763 }
 0x26b   : > { %v772_v63 = vadd.f32 %v764_v40, %v692_v46 }
 0x26d   : > { %v1080_v48 = vpop.permute.xlu0 %1079 }
 0x26e   : > { %v922_v41 = vpop.permute.xlu1 %921 }
 0x26f   : > { %v931_v60 = vadd.f32 %v922_v41, %v851_v61 }
 0x271   : > { %v971_v45 = vadd.f32 %v962_v49, %v931_v60  ;;  %v320_v3 = vpop.permute.xlu0 %319 }
 0x272   : > { %v1078_v32 = vpop.permute.xlu1 %1077  ;;  %v330_v22 = vadd.f32 %v320_v3, %v210_v58 }
 0x273   : > { %v1089_v53 = vadd.f32 %v1078_v32, %v1049_v20 }
 0x275   : > { %v964_v0 = vpop.permute.xlu0 %963  ;;  %v1129_v43 = vadd.f32 %v1118_v59, %v1089_v53 }
 0x276   : > { %v844_v37 = vpop.permute.xlu1 %843 }
 0x277   : > { %v852_v62 = vadd.f32 %v844_v37, %v772_v63 }
 0x279   : > { %v1120_v55 = vpop.permute.xlu0 %1119  ;;  %v932_v46 = vadd.f32 %v924_v19, %v852_v62 }
 0x27a   : > { %v1040_v30 = vpop.permute.xlu1 %1039 }
 0x27b   : > { %v1050_v57 = vadd.f32 %v1040_v30, %v1010_v15 }
 0x27d   : > { %v3331_v36 = vpop.permute.xlu0 %206  ;;  %v1090_v47 = vadd.f32 %v1080_v48, %v1050_v57 }
 0x27e   : > { %v203_v50 = vpop.permute.xlu1 %202 }
 0x27f   : > { %v1130_v31 = vadd.f32 %v1120_v55, %v1090_v47  ;;  %v211_v59 = vmul.f32 %v203_v50, %v2551_v25 }
 0x281   : > { %v440_v34 = vpop.permute.xlu0 %439 }
 0x282   : > { %v450_v20 = vadd.f32 %v440_v34, %v330_v22 }
 0x283   : > { %v1279_v42 = vpop.permute.xlu1 %1278 }
 0x285   : > { %v1082_v23 = vpop.permute.xlu0 %1081 }
 0x287   : > { %v438_v24 = vpop.permute.xlu1 %437 }
 0x288   : > { %v449_v16 = vadd.f32 %v438_v24, %v329_v38 }
 0x289   : > { %v322_v54 = vpop.permute.xlu0 %321 }
 0x28a   : > { %v331_v3 = vadd.f32 %v322_v54, %v211_v59 }
 0x28b   : > { %v1002_v11 = vpop.permute.xlu1 %1001 }
 0x28c   : > { %v1011_v44 = vadd.f32 %v1002_v11, %v971_v45  ;;  %v972_v45 = vadd.f32 %v964_v0, %v932_v46 }
 0x28d   : > { %v1044_v17 = vpop.permute.xlu0 %1043 }
 0x28f   : > { %v1158_v4 = vpop.permute.xlu1 %1157 }
 0x290   : > { %v1169_v61 = vadd.f32 %v1158_v4, %v1129_v43 }
 0x291   : > { %v1200_v39 = vpop.permute.xlu0 %1199 }
 0x293   : > { %v558_v5 = vpop.permute.xlu1 %557 }
 0x294   : > { %v569_v10 = vadd.f32 %v558_v5, %v449_v16 }
 0x295   : > { %v1287_v12 = vpop.permute.xlu0 %1286 }
 0x296   : > { %v1293_v13 = vadd.f32 %v1279_v42, %v569_v10 }
 0x297   : > { %v1042_v9 = vpop.permute.xlu1 %1041 }
 0x298   : > { %vm1297_vm5 = vcmp.gt.f32.partialorder %v1293_v13, 0.0  ;;  %v1301_v8 = vmul.f32 0.01, %v1293_v13  ;;  %v1051_v48 = vadd.f32 %v1042_v9, %v1011_v44 }
 0x299   : > { %v1215_v56 = vpop.permute.xlu0 %1214 }
 0x29a   : > { %v1305_v14 = vsel %vm1297_vm5, %v1293_v13, %v1301_v8  ;;  %v1091_v50 = vadd.f32 %v1082_v23, %v1051_v48  ;;  %vm1749_vm5 = vcmask 1041408  }
 0x29b   : > { %2080 = vmatprep.mubr.msk.f32.mxu0 %vm1325_vm6, %v1305_v14  ;;  %v1198_v51 = vpop.permute.xlu1 %1197 }
 0x29c   : > { %v1209_v40 = vadd.f32 %v1198_v51, %v1169_v61 }
 0x29d   : > { %v1162_v27 = vpop.permute.xlu0 %1161 }
 0x29e   : > { %v1229_v1 = vadd.f32 %v1215_v56, %v1209_v40 }
 0x29f   : > { %v1219_v18 = vpop.permute.xlu1 %1218 }
 0x2a0   : > { %v1237_v53 = vmul.f32 0.01, %v1229_v1  ;;  %vm1233_vm7 = vcmp.gt.f32.partialorder %v1229_v1, 0.0 }
 0x2a1   : > { %v324_v60 = vpop.permute.xlu0 %323 }
 0x2a2   : > { %v1241_v55 = vsel %vm1233_vm7, %v1229_v1, %v1237_v53  ;;  %v2427_v1 = vmov 32   ;;  %vm1745_vm7 = vcmask 80896  }
 0x2a3   : > { %2362 = vset.pattern.permute.xlu1 %v2427_v1  ;;  %2363 = vset.pattern.permute.xlu0 %v2427_v1 }
 0x2a4   : > { %v1283_v21 = vpop.permute.xlu1 %1282 }
 0x2a5   : > { %v1124_v30 = vpop.permute.xlu0 %1123 }
 0x2a8   : > { %v1004_v29 = vpop.permute.xlu1 %1003 }
 0x2a9   : > { %v1012_v52 = vadd.f32 %v1004_v29, %v972_v45  ;;  %v1227_v11 = vpop.permute.xlu0 %1226  ;;  %v212_v29 = vmul.f32 %v3331_v36, %v2551_v25  ;;  %v1453_v45 = vld [vmem:[%s3447_s1 + $0xf0] sm:$0xff] }
 0x2ab   : > { %v1052_v19 = vadd.f32 %v1044_v17, %v1012_v52  ;;  %v332_v58 = vadd.f32 %v324_v60, %v212_v29  ;;  %v1452_v60 = vld [vmem:[%s3447_s1 + $0xe8] sm:$0xff]  ;;  %v1743_v29 = vld [vmem:[%s3447_s1 + $0x118] sm:$0xff] }
 0x2ac   : > { %v1160_v35 = vpop.permute.xlu1 %1159  ;;  %1461 = vperm.xlu0 %2363, %v1452_v60  }
 0x2ad   : > { %v1170_v49 = vadd.f32 %v1160_v35, %v1130_v31  ;;  %v1164_v51 = vpop.permute.xlu0 %1163 }
 0x2af   : > { %v1210_v32 = vadd.f32 %v1200_v39, %v1170_v49 }
 0x2b0   : > { %v560_v2 = vpop.permute.xlu1 %559 }
 0x2b1   : > { %v570_v63 = vadd.f32 %v560_v2, %v450_v20  ;;  %v1230_v15 = vadd.f32 %v1219_v18, %v1210_v32  ;;  %v1204_v35 = vpop.permute.xlu0 %1203  ;;  %v3456_v32 = vmov 24  }
 0x2b2   : > { %2365 = vset.pattern.permute.xlu0 %v3456_v32 }
 0x2b3   : > { %v1294_v26 = vadd.f32 %v1283_v21, %v570_v63  ;;  %v1238_v0 = vmul.f32 0.01, %v1230_v15  ;;  %vm1234_vm9 = vcmp.gt.f32.partialorder %v1230_v15, 0.0 }
 0x2b4   : > { %v1122_v7 = vpop.permute.xlu1 %1121 }
 0x2b5   : > { %v1302_v57 = vmul.f32 0.01, %v1294_v26  ;;  %vm1298_vm8 = vcmp.gt.f32.partialorder %v1294_v26, 0.0  ;;  %v1131_v5 = vadd.f32 %v1122_v7, %v1091_v50  ;;  %v1242_v13 = vsel %vm1234_vm9, %v1230_v15, %v1238_v0 }
 0x2b6   : > { %vm2018_vm9 = vcmask 1024  }
 0x2b7   : > { %v1306_v34 = vsel %vm1298_vm8, %v1294_v26, %v1302_v57  ;;  %v1171_v17 = vadd.f32 %v1162_v27, %v1131_v5  ;;  %v1567_v57 = vld [vmem:[%s3447_s1 + $0x108] sm:$0xf]  ;;  %vm1843_vm8 = vcmask 64512  }
 0x2b8   : > { %v1223_v28 = vpop.permute.xlu1 %1222 }
 0x2bc   : > { %v442_v41 = vpop.permute.xlu1 %441 }
 0x2bd   : > { %v451_v33 = vadd.f32 %v442_v41, %v331_v3  ;;  %v1451_v41 = vld [vmem:[%s3447_s1 + $0xe0] sm:$0xff] }
 0x2be   : > { %1456 = vperm.xlu1 %2362, %v1451_v41  }
 0x2c0   : > { %v1084_v37 = vpop.permute.xlu1 %1083 }
 0x2c1   : > { %v1092_v24 = vadd.f32 %v1084_v37, %v1052_v19  ;;  %v1566_v19 = vld [vmem:[%s3447_s1 + $0x100] sm:$0xff] }
 0x2c2   : > { %1466 = vperm.xlu1 %2362, %v1453_v45  }
 0x2c3   : > { %v1132_v10 = vadd.f32 %v1124_v30, %v1092_v24 }
 0x2c4   : > { %v2358_v62 = vpop.permute.xlu1 %2357 }
 0x2c5   : > { %v2359_v42 = vunpack.i.l.bf16 %v2358_v62  ;;  %v2360_v4 = vunpack.i.h.bf16 %v2358_v62  ;;  %v1172_v18 = vadd.f32 %v1164_v51, %v1132_v10  ;;  %v1565_v62 = vld [vmem:[%s3447_s1 + $0xf8] sm:$0xff] }
 0x2c6   : > { %2364 = vset.pattern.permute.xlu1 %v3456_v32 }
 0x2c7   : > { %v1326_v38 = vsel %vm1325_vm6, %v1241_v55, %v2359_v42  ;;  %v1327_v8 = vsel %vm1325_vm6, %v1242_v13, %v2360_v4  ;;  %v1212_v2 = vadd.f32 %v1204_v35, %v1172_v18 }
 0x2c8   : > { %v562_v16 = vpop.permute.xlu1 %561  ;;  %1431 = vmatmul.mubr.f32.vlgmr.msra.gmra.mxu0 %v1326_v38 }
 0x2c9   : > { %v571_v44 = vadd.f32 %v562_v16, %v451_v33  ;;  %2081 = vmatprep.mubr.msk.f32.mxu0 %vm1325_vm6, %v1306_v34  ;;  %v1232_v47 = vadd.f32 %v1227_v11, %v1212_v2 }
 0x2cb   : > { %v1295_v9 = vadd.f32 %v1287_v12, %v571_v44  ;;  %v1240_v31 = vmul.f32 0.01, %v1232_v47  ;;  %vm1236_vm12 = vcmp.gt.f32.partialorder %v1232_v47, 0.0 }
 0x2cc   : > { %v1202_v14 = vpop.permute.xlu1 %1201  ;;  %1436 = vmatmul.mubr.f32.gmra.mxu0 %v1327_v8 }
 0x2cd   : > { %v1303_v54 = vmul.f32 0.01, %v1295_v9  ;;  %vm1299_vm10 = vcmp.gt.f32.partialorder %v1295_v9, 0.0  ;;  %v1211_v21 = vadd.f32 %v1202_v14, %v1171_v17  ;;  %v1244_v25 = vsel %vm1236_vm12, %v1232_v47, %v1240_v31  ;;  %v1661_v14 = vld [vmem:[%s3447_s1 + $0x110] sm:$0xff] }
 0x2ce   : > { %1664 = vperm.xlu1 %2364, %v1661_v14  }
 0x2cf   : > { %v1307_v23 = vsel %vm1299_vm10, %v1295_v9, %v1303_v54  ;;  %v1231_v12 = vadd.f32 %v1223_v28, %v1211_v21  ;;  %v1320_v28 = vpop.permute.xlu0 %1319 }
 0x2d0   : > { %v1291_v39 = vpop.permute.xlu1 %1290  ;;  %2082 = vmatprep.mubr.msk.f32.mxu0 %vm1325_vm6, %v1307_v23  ;;  %v1329_v63 = vsel %vm1325_vm6, %v1244_v25, %v1320_v28 }
 0x2d1   : > { %v1239_v43 = vmul.f32 0.01, %v1231_v12  ;;  %vm1235_vm11 = vcmp.gt.f32.partialorder %v1231_v12, 0.0 }
 0x2d3   : > { %v1243_v46 = vsel %vm1235_vm11, %v1231_v12, %v1239_v43  ;;  %v1825_v43 = vld [vmem:[%s3447_s1 + $0x138] sm:$0xff] }
 0x2d4   : > { %v444_v56 = vpop.permute.xlu1 %443  ;;  %1835 = vrot.lane.b32.xlu1 %v1825_v43, %s2414_s30 }
 0x2d5   : > { %v452_v7 = vadd.f32 %v444_v56, %v332_v58 }
 0x2d8   : > { %v564_v22 = vpop.permute.xlu1 %563 }
 0x2d9   : > { %v572_v61 = vadd.f32 %v564_v22, %v452_v7  ;;  %v1823_v7 = vld [vmem:[%s3447_s1 + $0x128] sm:$0xff]  ;;  %v1826_v22 = vld [vmem:[%s3447_s1 + $0x140] sm:$0xff] }
 0x2da   : > { %1837 = vrot.lane.b32.xlu0 %v1826_v22, %s2414_s30  ;;  %1831 = vrot.lane.b32.xlu1 %v1823_v7, %s2414_s30 }
 0x2db   : > { %v1296_v27 = vadd.f32 %v1291_v39, %v572_v61  ;;  %v1744_v39 = vld [vmem:[%s3447_s1 + $0x120] sm:$0x3]  ;;  %v1824_v61 = vld [vmem:[%s3447_s1 + $0x130] sm:$0xff] }
 0x2dc   : > { %v1318_v20 = vpop.permute.xlu1 %1317 }
 0x2dd   : > { %v1304_v40 = vmul.f32 0.01, %v1296_v27  ;;  %v1328_v49 = vsel %vm1325_vm6, %v1243_v46, %v1318_v20  ;;  %vm1300_vm13 = vcmp.gt.f32.partialorder %v1296_v27, 0.0  ;;  %v1941_v20 = vld [vmem:[%s3447_s1 + $0x148] sm:$0x3] }
 0x2de   : > { %1441 = vmatmul.mubr.f32.gmra.mxu0 %v1328_v49  ;;  %1833 = vrot.lane.b32.xlu0 %v1824_v61, %s2414_s30  ;;  %s2428_s30 = smov 96  }
 0x2df   : > { %v1308_v36 = vsel %vm1300_vm13, %v1296_v27, %v1304_v40 }
 0x2e0   : > { %2083 = vmatprep.mubr.msk.f32.mxu0 %vm1325_vm6, %v1308_v36 }
 0x2e2   : > { %1446 = vmatmul.mubr.f32.gmra.mxu0 %v1329_v63  ;;  %1943 = vrot.lane.b32.xlu0 %v1941_v20, %s2428_s30 }
 0x327   : > { %v1462_v0 = vpop.permute.xlu0 %1461 }
 0x339   : > { %v1457_v3 = vpop.permute.xlu1 %1456 }
 0x33d   : > { %v1467_v34 = vpop.permute.xlu1 %1466 }
 0x349   : > { %v1665_v35 = vpop.permute.xlu1 %1664 }
 0x34c   : > { %v1838_v46 = vpop.permute.xlu0 %1837 }
 0x34d   : > { %v1836_v49 = vpop.permute.xlu1 %1835 }
 0x350   : > { %v1834_v28 = vpop.permute.xlu0 %1833 }
 0x388   : > { %v1432_v52 = vpop.f32.mrf.mxu0 }
 0x38a   : > { %v1434_v26 = vpop.f32.mrf.mxu0 }
 0x38c   : > { %v1437_v37 = vpop.f32.mrf.mxu0 }
 0x38e   : > { %v1439_v59 = vpop.f32.mrf.mxu0 }
 0x39e   : > { %v1442_v53 = vpop.f32.mrf.mxu0 }
 0x3a0   : > { %v1444_v15 = vpop.f32.mrf.mxu0 }
 0x3a2   : > { %v1447_v30 = vpop.f32.mrf.mxu0 }
 0x3a3   : > { %2132 = vmatpush3.msra.mxu1 %v1447_v30 }
 0x3a4   : > { %v1449_v48 = vpop.f32.mrf.mxu0  ;;  %2133 = vmatprep.subr.mxu1 %v2424_v6 }
 0x3a5   : > { %2134 = vmatpush3.msra.mxu1 %v1442_v53  ;;  %v1944_v53 = vpop.permute.xlu0 %1943 }
 0x3a6   : > { %2135 = vmatprep.subr.mxu1 %v2424_v6 }
 0x3a7   : > { %2136 = vmatpush3.msra.mxu1 %v1437_v37 }
 0x3a8   : > { %2137 = vmatprep.subr.mxu1 %v2424_v6 }
 0x3a9   : > { %2138 = vmatpush3.msra.mxu1 %v1432_v52 }
 0x3aa   : > { %2140 = vmatmul.mubr.msk.f32.vlgmr.msra.gmra.mxu1 %vm1469_vm15, %v1451_v41  ;;  %2148 = vmatprep.subr.mxu1 %v2424_v6  ;;  %v1832_v41 = vpop.permute.xlu1 %1831 }
 0x3ab   : > { %2142 = vmatprep.mubr.msk.f32.mxu1 %vm2426_vm14, %v2424_v6  ;;  %2149 = vmatpush3.msk.msra.mxu1 %vm143_vm0, %v1567_v57 }
 0x3ac   : > { %2150 = vmatprep.subr.mxu1 %v2424_v6 }
 0x3ad   : > { %2151 = vmatpush3.msra.mxu1 %v1566_v19 }
 0x3ae   : > { %2143 = vmatmul.mubr.msk.f32.gmra.mxu1 %vm1469_vm15, %v1452_v60  ;;  %2152 = vmatprep.subr.mxu1 %v2424_v6 }
 0x3af   : > { %2145 = vmatprep.mubr.msk.f32.mxu1 %vm2426_vm14, %v2424_v6  ;;  %2153 = vmatpush3.msra.mxu1 %v1565_v62 }
 0x3b0   : > { %2163 = vmatprep.subr.mxu1 %v2424_v6 }
 0x3b2   : > { %2146 = vmatmul.mubr.msk.f32.gmra.mxu1 %vm1469_vm15, %v1453_v45 }
 0x3b3   : > { %2154 = vmatprep.mubr.msk.f32.mxu1 %vm2426_vm14, %v2424_v6 }
 0x46a   : > { %v1542_v42 = vpop.f32.mrf.mxu1 }
 0x46b   : > { %v1543_v24 = vadd.f32 %v1542_v42, %v1457_v3 }
 0x46c   : > { %v2141_v55 = vpop.f32.mrf.mxu1 }
 0x46d   : > { %vm1556_vm0 = vcmp.gt.f32.partialorder %v1543_v24, 0.0  ;;  %v1559_v11 = vmul.f32 0.01, %v1543_v24 }
 0x46e   : > { %v1547_v33 = vpop.f32.mrf.mxu1 }
 0x46f   : > { %v1562_v4 = vsel %vm1556_vm0, %v1543_v24, %v1559_v11  ;;  %v1548_v38 = vadd.f32 %v1547_v33, %v1462_v0 }
 0x470   : > { %v2144_v50 = vpop.f32.mrf.mxu1  ;;  %2155 = vmatmul.mubr.msk.f32.vlgmr.msra.gmra.mxu1 %vm1568_vm1, %v1562_v4 }
 0x471   : > { %vm1557_vm2 = vcmp.gt.f32.partialorder %v1548_v38, 0.0  ;;  %v1560_v16 = vmul.f32 0.01, %v1548_v38  ;;  %2157 = vmatprep.mubr.msk.f32.mxu1 %vm2426_vm14, %v2424_v6 }
 0x472   : > { %v1552_v44 = vpop.f32.mrf.mxu1 }
 0x473   : > { %v1553_v5 = vadd.f32 %v1552_v44, %v1467_v34  ;;  %v1563_v10 = vsel %vm1557_vm2, %v1548_v38, %v1560_v16 }
 0x474   : > { %v2147_v13 = vpop.f32.mrf.mxu1  ;;  %2158 = vmatmul.mubr.msk.f32.gmra.mxu1 %vm1568_vm1, %v1563_v10 }
 0x475   : > { %vm1558_vm3 = vcmp.gt.f32.partialorder %v1553_v5, 0.0  ;;  %v1561_v9 = vmul.f32 0.01, %v1553_v5  ;;  %2160 = vmatprep.mubr.msk.f32.mxu1 %vm2426_vm14, %v2424_v6 }
 0x477   : > { %v1564_v8 = vsel %vm1558_vm3, %v1553_v5, %v1561_v9 }
 0x478   : > { %2161 = vmatmul.mubr.msk.f32.gmra.mxu1 %vm1568_vm1, %v1564_v8 }
 0x479   : > { %2169 = vmatprep.mubr.msk.f32.mxu1 %vm2426_vm14, %v2424_v6 }
 0x530   : > { %v1647_v51 = vpop.f32.mrf.mxu1 }
 0x532   : > { %v2156_v54 = vpop.f32.mrf.mxu1 }
 0x534   : > { %v1652_v18 = vpop.f32.mrf.mxu1 }
 0x536   : > { %v2159_v17 = vpop.f32.mrf.mxu1 }
 0x538   : > { %v1657_v23 = vpop.f32.mrf.mxu1 }
 0x539   : > { %2164 = vmatpush3.msra.mxu1 %v1657_v23 }
 0x53a   : > { %v2162_v21 = vpop.f32.mrf.mxu1  ;;  %2165 = vmatprep.subr.mxu1 %v2424_v6 }
 0x53b   : > { %2166 = vmatpush3.msra.mxu1 %v1652_v18 }
 0x53c   : > { %2167 = vmatprep.subr.mxu1 %v2424_v6 }
 0x53d   : > { %2168 = vmatpush3.msra.mxu1 %v1647_v51 }
 0x53e   : > { %2170 = vmatmul.mubr.msk.f32.vlgmr.msra.gmra.mxu1 %vm1667_vm4, %v1661_v14  ;;  %2172 = vmatprep.subr.mxu1 %v2424_v6 }
 0x53f   : > { %2176 = vmatprep.mubr.msk.f32.mxu1 %vm2426_vm14, %v2424_v6  ;;  %2173 = vmatpush3.msk.msra.mxu1 %vm1749_vm5, %v1744_v39 }
 0x540   : > { %2174 = vmatprep.subr.mxu1 %v2424_v6 }
 0x541   : > { %2175 = vmatpush3.msra.mxu1 %v1743_v29 }
 0x5fe   : > { %v1736_v2 = vpop.f32.mrf.mxu1 }
 0x5ff   : > { %v1737_v12 = vadd.f32 %v1736_v2, %v1665_v35 }
 0x600   : > { %v2171_v56 = vpop.f32.mrf.mxu1 }
 0x601   : > { %vm1740_vm6 = vcmp.gt.f32.partialorder %v1737_v12, 0.0  ;;  %v1741_v58 = vmul.f32 0.01, %v1737_v12 }
 0x603   : > { %v1742_v47 = vsel %vm1740_vm6, %v1737_v12, %v1741_v58 }
 0x604   : > { %2177 = vmatmul.mubr.msk.f32.vlgmr.msra.gmra.mxu1 %vm1745_vm7, %v1742_v47 }
 0x605   : > { %2181 = vmatprep.mubr.msk.f32.mxu1 %vm1843_vm8, %v1823_v7 }
 0x6c4   : > { %v1819_v31 = vpop.f32.mrf.mxu1 }
 0x6c5   : > { %2179 = vmatprep.subr.mxu1 %v1819_v31 }
 0x6c6   : > { %v2178_v27 = vpop.f32.mrf.mxu1  ;;  %2180 = vmatpush3.msra.mxu1 %v1819_v31 }
 0x6c7   : > { %2182 = vmatmul.mubr.msk.f32.vlgmr.msra.gmra.mxu1 %vm1843_vm8, %v1824_v61  ;;  %2187 = vmatprep.subr.mxu1 %v2424_v6 }
 0x6c8   : > { %2184 = vmatprep.mubr.msk.f32.mxu1 %vm1843_vm8, %v1825_v43 }
 0x6cb   : > { %2185 = vmatmul.mubr.msk.f32.gmra.mxu1 %vm1843_vm8, %v1826_v22 }
 0x6cc   : > { %2195 = vmatprep.mubr.msk.f32.mxu1 %vm2426_vm14, %v2424_v6 }
 0x787   : > { %v2183_v40 = vpop.f32.mrf.mxu1 }
 0x788   : > { %v1924_v45 = vadd.f32 %v2183_v40, %v1834_v28 }
 0x789   : > { %v1918_v25 = vpop.f32.mrf.mxu1 }
 0x78a   : > { %v1919_v52 = vadd.f32 %v1918_v25, %v1832_v41  ;;  %v1938_v37 = vmax.f32 %v1924_v45, 0.0 }
 0x78b   : > { %v2186_v36 = vpop.f32.mrf.mxu1 }
 0x78c   : > { %v1934_v63 = vadd.f32 %v2186_v36, %v1838_v46  ;;  %v1937_v59 = vmax.f32 %v1919_v52, 0.0 }
 0x78d   : > { %v1928_v60 = vpop.f32.mrf.mxu1 }
 0x78e   : > { %v1940_v1 = vmax.f32 %v1934_v63, 0.0  ;;  %v1929_v32 = vadd.f32 %v1928_v60, %v1836_v49 }
 0x790   : > { %v1939_v26 = vmax.f32 %v1929_v32, 0.0  ;;  %2188 = vmatpush3.msra.mxu1 %v1940_v1 }
 0x791   : > { %2189 = vmatprep.subr.mxu1 %v2424_v6 }
 0x792   : > { %2190 = vmatpush3.msra.mxu1 %v1939_v26 }
 0x793   : > { %2191 = vmatprep.subr.mxu1 %v2424_v6 }
 0x794   : > { %2192 = vmatpush3.msra.mxu1 %v1938_v37 }
 0x795   : > { %2193 = vmatprep.subr.mxu1 %v2424_v6 }
 0x796   : > { %2194 = vmatpush3.msra.mxu1 %v1937_v59 }
 0x797   : > { %2196 = vmatmul.mubr.msk.f32.vlgmr.msra.gmra.mxu1 %vm1469_vm15, %v1941_v20 }
 0x857   : > { %v2014_v15 = vpop.f32.mrf.mxu1 }
 0x858   : > { %v2015_v30 = vadd.f32 %v2014_v15, %v1944_v53 }
 0x859   : > { %v2197_v48 = vpop.f32.mrf.mxu1 }
 0x85a   : > { %2019 = vst.msk [vmem:[%s138_s13] sm:$0x3] %vm2018_vm9, %v2015_v30 }
 0x85b PF: > { %s12_s9 = sadd.s32 1, %s2376_s9  }
 0x85c   : > { %p9_p4 = scmp.ge.s32.totalorder %s12_s9, 4  }
 0x85e   :  { %11 = sbr.rel (!%p9_p4) target bundleno = 1 (0x1), region = 58 }

</bundles_post_ra>
